<compile_context>
chip_gen: v6e
topology: v6e:2x2x1
jax: 0.10.0
libtpu: 0.0.40
codegen_flags: <defaults>
</compile_context>

<pallas_src>
import functools

import numpy as np
import jax
import jax.numpy as jnp
from jax.experimental import pallas as pl
from jax.experimental.pallas import tpu as pltpu


def _sigmoid(x):
    # tanh-based logistic: uses the EUP (free slot) instead of a VPU divide,
    # and is numerically stable for large |x|.
    return 0.5 * jnp.tanh(0.5 * x) + 0.5


# ----------------------------------------------------------------------------
# Fused kernel: temporal GLU -> Align + Chebyshev graph conv + ReLU ->
#               temporal GLU -> LayerNorm, all VMEM-resident, no relayouts.
# ----------------------------------------------------------------------------
def stconv_fused_kernel(x_ref,
                        w1p_ref, b1p_ref, w1q_ref, b1q_ref,
                        wa_ref, ba_ref,
                        wc_ref, tch_ref, bc_ref,
                        w2p_ref, b2p_ref, w2q_ref, b2q_ref,
                        avg_r_ref, avg_c_ref, g_ref, bt_ref,
                        out_ref):
    f32 = jnp.float32
    bf16 = jnp.bfloat16

    x = x_ref[...]                                           # (bbN, T*Cin) bf16

    # ---- temporal GLU conv #1 (Align residual folded into w1p) ------------
    p1 = jnp.dot(x, w1p_ref[...], preferred_element_type=f32) + b1p_ref[...]
    q1 = jnp.dot(x, w1q_ref[...], preferred_element_type=f32) + b1q_ref[...]
    h1 = (p1 * _sigmoid(q1)).astype(bf16)                    # (bbN, T1*C0)

    # ---- spatial layer: Align 1x1 + Chebyshev graph conv + ReLU -----------
    xsp = jnp.dot(h1, wa_ref[...], preferred_element_type=f32) + ba_ref[...]
    xsp_b = xsp.astype(bf16)                                 # (bbN, T1*C1)
    # k = 0: T_0(gso) = I; wc[0] already contains +I for the residual add.
    gc = jnp.dot(xsp_b, wc_ref[0], preferred_element_type=f32)
    ks = wc_ref.shape[0]
    for k in range(1, ks):
        zk = jnp.dot(tch_ref[k - 1], xsp_b, preferred_element_type=f32)
        gc = gc + jnp.dot(zk.astype(bf16), wc_ref[k],
                          preferred_element_type=f32)
    h2 = jnp.maximum(gc + bc_ref[...], 0.0).astype(bf16)     # (bbN, T1*C1)

    # ---- temporal GLU conv #2 (Align residual folded into w2p) ------------
    p2 = jnp.dot(h2, w2p_ref[...], preferred_element_type=f32) + b2p_ref[...]
    q2 = jnp.dot(h2, w2q_ref[...], preferred_element_type=f32) + b2q_ref[...]
    h3 = p2 * _sigmoid(q2)                                   # (bbN, T2*C2) f32

    # ---- LayerNorm over [n_vertex, channel[2]] per (batch, time) ----------
    # Group-averaging projectors run on the MXU (f32 operands) so the tensor
    # stays lane-dense 2-D; centered two-pass variance for stability.
    mean = jnp.dot(jnp.dot(avg_r_ref[...], h3, preferred_element_type=f32),
                   avg_c_ref[...], preferred_element_type=f32)
    d = h3 - mean
    var = jnp.dot(jnp.dot(avg_r_ref[...], d * d, preferred_element_type=f32),
                  avg_c_ref[...], preferred_element_type=f32)
    y = d * jax.lax.rsqrt(var + 1e-5) * g_ref[...] + bt_ref[...]

    out_ref[...] = y.astype(out_ref.dtype)                   # lane-dense store


# ----------------------------------------------------------------------------
# Host-side parameter packing (done once, outside jit).
# ----------------------------------------------------------------------------
def _block_diag(mat, reps):
    return np.kron(np.eye(reps, dtype=np.float32), mat.astype(np.float32))


def _temporal_weights(w, b, Kt, cin, cout, t_in):
    """w: (2*cout, cin, Kt) torch causal-conv weight.  Returns banded-over-time
    matmul weights (Wp, bp, Wq, bq) for the (rows, t*cin + ci) lane layout,
    with the GLU Align residual (zero-pad, cin <= cout) folded into Wp."""
    t_out = t_in - (Kt - 1)
    wp = np.zeros((t_in * cin, t_out * cout), np.float32)
    wq = np.zeros_like(wp)
    for t in range(t_out):
        cols = slice(t * cout, (t + 1) * cout)
        for kt in range(Kt):
            rows = slice((t + kt) * cin, (t + kt + 1) * cin)
            wp[rows, cols] += w[:cout, :, kt].T
            wq[rows, cols] += w[cout:, :, kt].T
        for ci in range(cin):          # fold x_in residual: identity band
            wp[(t + Kt - 1) * cin + ci, t * cout + ci] += 1.0
    bp = np.tile(b[:cout], t_out)[None, :].astype(np.float32)
    bq = np.tile(b[cout:], t_out)[None, :].astype(np.float32)
    return wp, bp, wq, bq


def _pick_block_batch(batch, n_vertex, rows_target=256):
    """Batch elements stacked per grid step: enough rows to feed the MXU, but
    keep >= 2 grid steps when possible (v7x: 2 TensorCores) and an
    8-divisible row block (Pallas sublane constraint)."""
    bb = max(1, min(batch, rows_target // max(n_vertex, 1)))
    while bb > 1 and batch % bb:
        bb -= 1
    while bb > 1 and batch // bb < 2:
        bb -= 1
        while bb > 1 and batch % bb:
            bb -= 1
    if (bb * n_vertex) % 8 and bb != batch:
        bb = batch
    return bb


def pack_stconv_params(*, T, n_vertex, batch, Kt, Ks, c_in, channel,
                       w1, b1, wa, ba, wc, bc, gso, w2, b2,
                       ln_gamma, ln_beta, block_batch=None):
    """Pack PyTorch-layout STConvBlock parameters into the banded /
    block-diagonal matrices consumed by the fused kernel (bf16 MXU operands,
    f32 biases & LayerNorm constants)."""
    N = n_vertex
    c0, c1, c2 = channel
    T1 = T - (Kt - 1)
    T2 = T1 - (Kt - 1)
    assert T2 >= 1, "temporal length too small for two Kt-tap convolutions"
    assert c_in <= c0 and c1 <= c2, (
        "Align with c_in > c_out on the temporal paths is not packed here")
    bb = block_batch if block_batch is not None else _pick_block_batch(batch, N)
    assert batch % bb == 0

    w1p, b1p, w1q, b1q = _temporal_weights(
        np.asarray(w1, np.float32), np.asarray(b1, np.float32), Kt, c_in, c0, T)
    w2p, b2p, w2q, b2q = _temporal_weights(
        np.asarray(w2, np.float32), np.asarray(b2, np.float32), Kt, c1, c2, T1)

    # Align 1x1 conv (c0 -> c1) of the spatial layer, block-diag over time.
    wa_big = _block_diag(np.asarray(wa, np.float32).T, T1)    # (T1*c0, T1*c1)
    ba_big = np.tile(np.asarray(ba, np.float32).reshape(-1), T1)[None, :]

    # Chebyshev channel weights, block-diag over time; spatial residual folded
    # into k = 0 (T_0 = I).
    wc_np = np.asarray(wc, np.float32).copy()
    wc_np[0] += np.eye(c1, dtype=np.float32)
    wc_big = np.stack([_block_diag(wc_np[k], T1) for k in range(Ks)])
    bc_big = np.tile(np.asarray(bc, np.float32).reshape(-1), T1)[None, :]

    # Chebyshev vertex-mixing polynomials T_k(gso) for k >= 1, block-diag over
    # the batch elements packed into one grid step.
    gso = np.asarray(gso, np.float32)
    chebs = [np.eye(N, dtype=np.float32), gso]
    for _ in range(2, max(Ks, 2)):
        chebs.append(2.0 * gso @ chebs[-1] - chebs[-2])
    tks = chebs[1:Ks] if Ks >= 2 else [np.zeros((N, N), np.float32)]
    tch = np.stack([_block_diag(t, bb) for t in tks])

    # LayerNorm([n_vertex, c2]) helpers: group-averaging projectors and the
    # affine params tiled to the lane-dense (bb*N, T2*c2) layout.
    avg_row = _block_diag(np.full((N, N), 1.0 / N, np.float32), bb)
    avg_col = _block_diag(np.full((c2, c2), 1.0 / c2, np.float32), T2)
    gamma = np.tile(np.tile(np.asarray(ln_gamma, np.float32), (1, T2)), (bb, 1))
    beta = np.tile(np.tile(np.asarray(ln_beta, np.float32), (1, T2)), (bb, 1))

    bf, f32 = jnp.bfloat16, jnp.float32
    return dict(
        w1p=jnp.asarray(w1p, bf), b1p=jnp.asarray(b1p, f32),
        w1q=jnp.asarray(w1q, bf), b1q=jnp.asarray(b1q, f32),
        wa=jnp.asarray(wa_big, bf), ba=jnp.asarray(ba_big, f32),
        wc=jnp.asarray(wc_big, bf), tch=jnp.asarray(tch, bf),
        bc=jnp.asarray(bc_big, f32),
        w2p=jnp.asarray(w2p, bf), b2p=jnp.asarray(b2p, f32),
        w2q=jnp.asarray(w2q, bf), b2q=jnp.asarray(b2q, f32),
        avg_row=jnp.asarray(avg_row, f32), avg_col=jnp.asarray(avg_col, f32),
        gamma=jnp.asarray(gamma, f32), beta=jnp.asarray(beta, f32),
    )


# ----------------------------------------------------------------------------
# Forward wrapper: NCHW (B, C_in, T, N) -> NCHW (B, channel[2], T - 2*(Kt-1), N)
# ----------------------------------------------------------------------------
def stconv_block_forward(x_nchw, params, *, Kt, C2):
    B, Cin, T, N = x_nchw.shape
    T1 = T - (Kt - 1)
    T2 = T1 - (Kt - 1)
    bbn = params["gamma"].shape[0]                 # rows per grid step (static)
    assert (B * N) % bbn == 0
    assert params["gamma"].shape[1] == T2 * C2
    grid = ((B * N) // bbn,)

    # NCHW -> vertex-major rows with a (time, channel) lane-dense last dim;
    # bf16 halves the kernel's HBM read of x and feeds the MXU at full rate.
    # TODO(synk): when STConvBlocks are chained, keep this layout between
    #             blocks and only transpose at the model edges.
    x2d = jnp.transpose(x_nchw, (0, 3, 2, 1)).reshape(B * N, T * Cin)
    x2d = x2d.astype(jnp.bfloat16)

    weights = (params["w1p"], params["b1p"], params["w1q"], params["b1q"],
               params["wa"], params["ba"],
               params["wc"], params["tch"], params["bc"],
               params["w2p"], params["b2p"], params["w2q"], params["b2q"],
               params["avg_row"], params["avg_col"],
               params["gamma"], params["beta"])

    def full_spec(arr):
        nd = arr.ndim
        return pl.BlockSpec(arr.shape, lambda g, nd=nd: (0,) * nd)

    out2d = pl.pallas_call(
        stconv_fused_kernel,
        out_shape=jax.ShapeDtypeStruct((B * N, T2 * C2), jnp.float32),
        grid=grid,
        in_specs=[pl.BlockSpec((bbn, T * Cin), lambda g: (g, 0))]
                 + [full_spec(w) for w in weights],
        out_specs=pl.BlockSpec((bbn, T2 * C2), lambda g: (g, 0)),
        compiler_params=pltpu.CompilerParams(
            dimension_semantics=("parallel",),
            vmem_limit_bytes=32 * 1024 * 1024),
    )(x2d, *weights)

    out = out2d.reshape(B, N, T2, C2)
    # Back to NCHW = (B, C2, T2, N), matching the PyTorch module output.
    return jnp.transpose(out, (0, 3, 2, 1))


# ----------------------------------------------------------------------------
# Deterministic parameter construction + driver.
# ----------------------------------------------------------------------------
if __name__ == "__main__":
    key = jax.random.PRNGKey(0)
    B, T, N = 2, 12, 16
    Kt, Ks = 3, 3
    last_block_channel = 4
    channel = (16, 8, 16)
    c_in, c0, c1, c2 = last_block_channel, *channel

    keys = jax.random.split(key, 10)

    def rnd(k, shape, scale=0.1):
        return scale * jax.random.normal(k, shape, dtype=jnp.float32)

    # tmp_conv1: Conv2d(c_in, 2*c0, kernel=(Kt, 1)) -> weight (2*c0, c_in, Kt).
    w1 = rnd(keys[0], (2 * c0, c_in, Kt))
    b1 = rnd(keys[1], (2 * c0,))
    # spat_conv: Align 1x1 conv (c0 -> c1) + Chebyshev weights (Ks, c1, c1).
    wa = rnd(keys[2], (c1, c0))
    ba = rnd(keys[3], (c1,))
    wc = rnd(keys[4], (Ks, c1, c1))
    bc = rnd(keys[5], (c1,))
    gso_raw = rnd(keys[6], (N, N), scale=0.3)
    gso = 0.5 * (gso_raw + gso_raw.T)              # symmetric GSO
    # tmp_conv2: Conv2d(c1, 2*c2, kernel=(Kt, 1)).
    w2 = rnd(keys[7], (2 * c2, c1, Kt))
    b2 = rnd(keys[8], (2 * c2,))
    # LayerNorm([n_vertex, channel[2]]) default init.
    ln_gamma = jnp.ones((N, c2), jnp.float32)
    ln_beta = jnp.zeros((N, c2), jnp.float32)

    packed = pack_stconv_params(
        T=T, n_vertex=N, batch=B, Kt=Kt, Ks=Ks, c_in=c_in, channel=channel,
        w1=np.asarray(w1), b1=np.asarray(b1),
        wa=np.asarray(wa), ba=np.asarray(ba),
        wc=np.asarray(wc), bc=np.asarray(bc), gso=np.asarray(gso),
        w2=np.asarray(w2), b2=np.asarray(b2),
        ln_gamma=np.asarray(ln_gamma), ln_beta=np.asarray(ln_beta))

    # Input in NCHW = (B, C, T, N).
    x = rnd(keys[9], (B, c_in, T, N), scale=1.0)

    fwd = jax.jit(functools.partial(stconv_block_forward, Kt=Kt, C2=c2))
    out = jax.block_until_ready(fwd(x, packed))

    T2 = T - 2 * (Kt - 1)
    assert out.shape == (B, c2, T2, N), out.shape
    assert bool(jnp.all(jnp.isfinite(out)))
    print("KERNEL_OK")
</pallas_src>

<mosaic_0001>
module attributes {stable_mosaic.version = 11 : i64} {
  func.func @stconv_fused_kernel(%arg0: i32, %arg1: memref<16x48xbf16, #tpu.memory_space<vmem>>, %arg2: memref<48x160xbf16, #tpu.memory_space<vmem>>, %arg3: memref<1x160xf32, #tpu.memory_space<vmem>>, %arg4: memref<48x160xbf16, #tpu.memory_space<vmem>>, %arg5: memref<1x160xf32, #tpu.memory_space<vmem>>, %arg6: memref<160x80xbf16, #tpu.memory_space<vmem>>, %arg7: memref<1x80xf32, #tpu.memory_space<vmem>>, %arg8: memref<3x80x80xbf16, #tpu.memory_space<vmem>>, %arg9: memref<2x16x16xbf16, #tpu.memory_space<vmem>>, %arg10: memref<1x80xf32, #tpu.memory_space<vmem>>, %arg11: memref<80x128xbf16, #tpu.memory_space<vmem>>, %arg12: memref<1x128xf32, #tpu.memory_space<vmem>>, %arg13: memref<80x128xbf16, #tpu.memory_space<vmem>>, %arg14: memref<1x128xf32, #tpu.memory_space<vmem>>, %arg15: memref<16x16xf32, #tpu.memory_space<vmem>>, %arg16: memref<128x128xf32, #tpu.memory_space<vmem>>, %arg17: memref<16x128xf32, #tpu.memory_space<vmem>>, %arg18: memref<16x128xf32, #tpu.memory_space<vmem>>, %arg19: memref<16x128xf32, #tpu.memory_space<vmem>>) attributes {dimension_semantics = [#tpu.dimension_semantics<parallel>], iteration_bounds = array<i64: 2>, scalar_prefetch = 0 : i64, scratch_operands = 0 : i64, tpu.core_type = #tpu.core_type<tc>, window_params = [{transform_indices = @transform_0, window_bounds = array<i64: 16, 48>}, {pipeline_mode = #tpu.pipeline_mode<synchronous>, transform_indices = @transform_1, window_bounds = array<i64: 48, 160>}, {pipeline_mode = #tpu.pipeline_mode<synchronous>, transform_indices = @transform_2, window_bounds = array<i64: 1, 160>}, {pipeline_mode = #tpu.pipeline_mode<synchronous>, transform_indices = @transform_3, window_bounds = array<i64: 48, 160>}, {pipeline_mode = #tpu.pipeline_mode<synchronous>, transform_indices = @transform_4, window_bounds = array<i64: 1, 160>}, {pipeline_mode = #tpu.pipeline_mode<synchronous>, transform_indices = @transform_5, window_bounds = array<i64: 160, 80>}, {pipeline_mode = #tpu.pipeline_mode<synchronous>, transform_indices = @transform_6, window_bounds = array<i64: 1, 80>}, {pipeline_mode = #tpu.pipeline_mode<synchronous>, transform_indices = @transform_7, window_bounds = array<i64: 3, 80, 80>}, {pipeline_mode = #tpu.pipeline_mode<synchronous>, transform_indices = @transform_8, window_bounds = array<i64: 2, 16, 16>}, {pipeline_mode = #tpu.pipeline_mode<synchronous>, transform_indices = @transform_9, window_bounds = array<i64: 1, 80>}, {pipeline_mode = #tpu.pipeline_mode<synchronous>, transform_indices = @transform_10, window_bounds = array<i64: 80, 128>}, {pipeline_mode = #tpu.pipeline_mode<synchronous>, transform_indices = @transform_11, window_bounds = array<i64: 1, 128>}, {pipeline_mode = #tpu.pipeline_mode<synchronous>, transform_indices = @transform_12, window_bounds = array<i64: 80, 128>}, {pipeline_mode = #tpu.pipeline_mode<synchronous>, transform_indices = @transform_13, window_bounds = array<i64: 1, 128>}, {pipeline_mode = #tpu.pipeline_mode<synchronous>, transform_indices = @transform_14, window_bounds = array<i64: 16, 16>}, {pipeline_mode = #tpu.pipeline_mode<synchronous>, transform_indices = @transform_15, window_bounds = array<i64: 128, 128>}, {pipeline_mode = #tpu.pipeline_mode<synchronous>, transform_indices = @transform_16, window_bounds = array<i64: 16, 128>}, {pipeline_mode = #tpu.pipeline_mode<synchronous>, transform_indices = @transform_17, window_bounds = array<i64: 16, 128>}, {transform_indices = @transform_18, window_bounds = array<i64: 16, 128>}]} {
    %c0 = arith.constant 0 : index
    %c0_0 = arith.constant 0 : index
    %0 = vector.load %arg1[%c0, %c0_0] : memref<16x48xbf16, #tpu.memory_space<vmem>>, vector<16x48xbf16>
    %c0_1 = arith.constant 0 : index
    %c0_2 = arith.constant 0 : index
    %1 = vector.load %arg2[%c0_1, %c0_2] : memref<48x160xbf16, #tpu.memory_space<vmem>>, vector<48x160xbf16>
    %cst = arith.constant dense<0.000000e+00> : vector<16x160xf32>
    %2 = tpu.matmul %0, %1, %cst {dimension_numbers = #tpu.dot_dimension_numbers<[1], [0], [0], [1], [0, 0, 1, 1], [], []>} : vector<16x48xbf16>, vector<48x160xbf16>, vector<16x160xf32> -> vector<16x160xf32>
    %c0_3 = arith.constant 0 : index
    %c0_4 = arith.constant 0 : index
    %3 = vector.load %arg3[%c0_3, %c0_4] : memref<1x160xf32, #tpu.memory_space<vmem>>, vector<1x160xf32>
    %4 = vector.broadcast %3 : vector<1x160xf32> to vector<16x160xf32>
    %5 = arith.addf %2, %4 : vector<16x160xf32>
    %c0_5 = arith.constant 0 : index
    %c0_6 = arith.constant 0 : index
    %6 = vector.load %arg4[%c0_5, %c0_6] : memref<48x160xbf16, #tpu.memory_space<vmem>>, vector<48x160xbf16>
    %cst_7 = arith.constant dense<0.000000e+00> : vector<16x160xf32>
    %7 = tpu.matmul %0, %6, %cst_7 {dimension_numbers = #tpu.dot_dimension_numbers<[1], [0], [0], [1], [0, 0, 1, 1], [], []>} : vector<16x48xbf16>, vector<48x160xbf16>, vector<16x160xf32> -> vector<16x160xf32>
    %c0_8 = arith.constant 0 : index
    %c0_9 = arith.constant 0 : index
    %8 = vector.load %arg5[%c0_8, %c0_9] : memref<1x160xf32, #tpu.memory_space<vmem>>, vector<1x160xf32>
    %9 = vector.broadcast %8 : vector<1x160xf32> to vector<16x160xf32>
    %10 = arith.addf %7, %9 : vector<16x160xf32>
    %cst_10 = arith.constant 5.000000e-01 : f32
    %11 = vector.broadcast %cst_10 : f32 to vector<16x160xf32>
    %12 = arith.mulf %11, %10 : vector<16x160xf32>
    %13 = math.tanh %12 : vector<16x160xf32>
    %cst_11 = arith.constant 5.000000e-01 : f32
    %14 = vector.broadcast %cst_11 : f32 to vector<16x160xf32>
    %15 = arith.mulf %14, %13 : vector<16x160xf32>
    %cst_12 = arith.constant 5.000000e-01 : f32
    %16 = vector.broadcast %cst_12 : f32 to vector<16x160xf32>
    %17 = arith.addf %15, %16 : vector<16x160xf32>
    %18 = arith.mulf %5, %17 : vector<16x160xf32>
    %19 = arith.truncf %18 : vector<16x160xf32> to vector<16x160xbf16>
    %c0_13 = arith.constant 0 : index
    %c0_14 = arith.constant 0 : index
    %20 = vector.load %arg6[%c0_13, %c0_14] : memref<160x80xbf16, #tpu.memory_space<vmem>>, vector<160x80xbf16>
    %cst_15 = arith.constant dense<0.000000e+00> : vector<16x80xf32>
    %21 = tpu.matmul %19, %20, %cst_15 {dimension_numbers = #tpu.dot_dimension_numbers<[1], [0], [0], [1], [0, 0, 1, 1], [], []>} : vector<16x160xbf16>, vector<160x80xbf16>, vector<16x80xf32> -> vector<16x80xf32>
    %c0_16 = arith.constant 0 : index
    %c0_17 = arith.constant 0 : index
    %22 = vector.load %arg7[%c0_16, %c0_17] : memref<1x80xf32, #tpu.memory_space<vmem>>, vector<1x80xf32>
    %23 = vector.broadcast %22 : vector<1x80xf32> to vector<16x80xf32>
    %24 = arith.addf %21, %23 : vector<16x80xf32>
    %25 = arith.truncf %24 : vector<16x80xf32> to vector<16x80xbf16>
    %c0_18 = arith.constant 0 : index
    %c0_19 = arith.constant 0 : index
    %c0_20 = arith.constant 0 : index
    %26 = vector.load %arg8[%c0_18, %c0_19, %c0_20] : memref<3x80x80xbf16, #tpu.memory_space<vmem>>, vector<1x80x80xbf16>
    %27 = vector.shape_cast %26 : vector<1x80x80xbf16> to vector<80x80xbf16>
    %cst_21 = arith.constant dense<0.000000e+00> : vector<16x80xf32>
    %28 = tpu.matmul %25, %27, %cst_21 {dimension_numbers = #tpu.dot_dimension_numbers<[1], [0], [0], [1], [0, 0, 1, 1], [], []>} : vector<16x80xbf16>, vector<80x80xbf16>, vector<16x80xf32> -> vector<16x80xf32>
    %c0_22 = arith.constant 0 : index
    %c0_23 = arith.constant 0 : index
    %c0_24 = arith.constant 0 : index
    %29 = vector.load %arg9[%c0_22, %c0_23, %c0_24] : memref<2x16x16xbf16, #tpu.memory_space<vmem>>, vector<1x16x16xbf16>
    %30 = vector.shape_cast %29 : vector<1x16x16xbf16> to vector<16x16xbf16>
    %cst_25 = arith.constant dense<0.000000e+00> : vector<16x80xf32>
    %31 = tpu.matmul %30, %25, %cst_25 {dimension_numbers = #tpu.dot_dimension_numbers<[1], [0], [0], [1], [0, 0, 1, 1], [], []>} : vector<16x16xbf16>, vector<16x80xbf16>, vector<16x80xf32> -> vector<16x80xf32>
    %32 = arith.truncf %31 : vector<16x80xf32> to vector<16x80xbf16>
    %c1 = arith.constant 1 : index
    %c0_26 = arith.constant 0 : index
    %c0_27 = arith.constant 0 : index
    %33 = vector.load %arg8[%c1, %c0_26, %c0_27] : memref<3x80x80xbf16, #tpu.memory_space<vmem>>, vector<1x80x80xbf16>
    %34 = vector.shape_cast %33 : vector<1x80x80xbf16> to vector<80x80xbf16>
    %cst_28 = arith.constant dense<0.000000e+00> : vector<16x80xf32>
    %35 = tpu.matmul %32, %34, %cst_28 {dimension_numbers = #tpu.dot_dimension_numbers<[1], [0], [0], [1], [0, 0, 1, 1], [], []>} : vector<16x80xbf16>, vector<80x80xbf16>, vector<16x80xf32> -> vector<16x80xf32>
    %36 = arith.addf %28, %35 : vector<16x80xf32>
    %c1_29 = arith.constant 1 : index
    %c0_30 = arith.constant 0 : index
    %c0_31 = arith.constant 0 : index
    %37 = vector.load %arg9[%c1_29, %c0_30, %c0_31] : memref<2x16x16xbf16, #tpu.memory_space<vmem>>, vector<1x16x16xbf16>
    %38 = vector.shape_cast %37 : vector<1x16x16xbf16> to vector<16x16xbf16>
    %cst_32 = arith.constant dense<0.000000e+00> : vector<16x80xf32>
    %39 = tpu.matmul %38, %25, %cst_32 {dimension_numbers = #tpu.dot_dimension_numbers<[1], [0], [0], [1], [0, 0, 1, 1], [], []>} : vector<16x16xbf16>, vector<16x80xbf16>, vector<16x80xf32> -> vector<16x80xf32>
    %40 = arith.truncf %39 : vector<16x80xf32> to vector<16x80xbf16>
    %c2 = arith.constant 2 : index
    %c0_33 = arith.constant 0 : index
    %c0_34 = arith.constant 0 : index
    %41 = vector.load %arg8[%c2, %c0_33, %c0_34] : memref<3x80x80xbf16, #tpu.memory_space<vmem>>, vector<1x80x80xbf16>
    %42 = vector.shape_cast %41 : vector<1x80x80xbf16> to vector<80x80xbf16>
    %cst_35 = arith.constant dense<0.000000e+00> : vector<16x80xf32>
    %43 = tpu.matmul %40, %42, %cst_35 {dimension_numbers = #tpu.dot_dimension_numbers<[1], [0], [0], [1], [0, 0, 1, 1], [], []>} : vector<16x80xbf16>, vector<80x80xbf16>, vector<16x80xf32> -> vector<16x80xf32>
    %44 = arith.addf %36, %43 : vector<16x80xf32>
    %c0_36 = arith.constant 0 : index
    %c0_37 = arith.constant 0 : index
    %45 = vector.load %arg10[%c0_36, %c0_37] : memref<1x80xf32, #tpu.memory_space<vmem>>, vector<1x80xf32>
    %46 = vector.broadcast %45 : vector<1x80xf32> to vector<16x80xf32>
    %47 = arith.addf %44, %46 : vector<16x80xf32>
    %cst_38 = arith.constant 0.000000e+00 : f32
    %48 = vector.broadcast %cst_38 : f32 to vector<16x80xf32>
    %49 = arith.maximumf %47, %48 : vector<16x80xf32>
    %50 = arith.truncf %49 : vector<16x80xf32> to vector<16x80xbf16>
    %c0_39 = arith.constant 0 : index
    %c0_40 = arith.constant 0 : index
    %51 = vector.load %arg11[%c0_39, %c0_40] : memref<80x128xbf16, #tpu.memory_space<vmem>>, vector<80x128xbf16>
    %cst_41 = arith.constant dense<0.000000e+00> : vector<16x128xf32>
    %52 = tpu.matmul %50, %51, %cst_41 {dimension_numbers = #tpu.dot_dimension_numbers<[1], [0], [0], [1], [0, 0, 1, 1], [], []>} : vector<16x80xbf16>, vector<80x128xbf16>, vector<16x128xf32> -> vector<16x128xf32>
    %c0_42 = arith.constant 0 : index
    %c0_43 = arith.constant 0 : index
    %53 = vector.load %arg12[%c0_42, %c0_43] : memref<1x128xf32, #tpu.memory_space<vmem>>, vector<1x128xf32>
    %54 = vector.broadcast %53 : vector<1x128xf32> to vector<16x128xf32>
    %55 = arith.addf %52, %54 : vector<16x128xf32>
    %c0_44 = arith.constant 0 : index
    %c0_45 = arith.constant 0 : index
    %56 = vector.load %arg13[%c0_44, %c0_45] : memref<80x128xbf16, #tpu.memory_space<vmem>>, vector<80x128xbf16>
    %cst_46 = arith.constant dense<0.000000e+00> : vector<16x128xf32>
    %57 = tpu.matmul %50, %56, %cst_46 {dimension_numbers = #tpu.dot_dimension_numbers<[1], [0], [0], [1], [0, 0, 1, 1], [], []>} : vector<16x80xbf16>, vector<80x128xbf16>, vector<16x128xf32> -> vector<16x128xf32>
    %c0_47 = arith.constant 0 : index
    %c0_48 = arith.constant 0 : index
    %58 = vector.load %arg14[%c0_47, %c0_48] : memref<1x128xf32, #tpu.memory_space<vmem>>, vector<1x128xf32>
    %59 = vector.broadcast %58 : vector<1x128xf32> to vector<16x128xf32>
    %60 = arith.addf %57, %59 : vector<16x128xf32>
    %cst_49 = arith.constant 5.000000e-01 : f32
    %61 = vector.broadcast %cst_49 : f32 to vector<16x128xf32>
    %62 = arith.mulf %61, %60 : vector<16x128xf32>
    %63 = math.tanh %62 : vector<16x128xf32>
    %cst_50 = arith.constant 5.000000e-01 : f32
    %64 = vector.broadcast %cst_50 : f32 to vector<16x128xf32>
    %65 = arith.mulf %64, %63 : vector<16x128xf32>
    %cst_51 = arith.constant 5.000000e-01 : f32
    %66 = vector.broadcast %cst_51 : f32 to vector<16x128xf32>
    %67 = arith.addf %65, %66 : vector<16x128xf32>
    %68 = arith.mulf %55, %67 : vector<16x128xf32>
    %c0_52 = arith.constant 0 : index
    %c0_53 = arith.constant 0 : index
    %69 = vector.load %arg15[%c0_52, %c0_53] : memref<16x16xf32, #tpu.memory_space<vmem>>, vector<16x16xf32>
    %cst_54 = arith.constant dense<0.000000e+00> : vector<16x128xf32>
    %70 = tpu.matmul %69, %68, %cst_54 {dimension_numbers = #tpu.dot_dimension_numbers<[1], [0], [0], [1], [0, 0, 1, 1], [], []>} : vector<16x16xf32>, vector<16x128xf32>, vector<16x128xf32> -> vector<16x128xf32>
    %c0_55 = arith.constant 0 : index
    %c0_56 = arith.constant 0 : index
    %71 = vector.load %arg16[%c0_55, %c0_56] : memref<128x128xf32, #tpu.memory_space<vmem>>, vector<128x128xf32>
    %cst_57 = arith.constant dense<0.000000e+00> : vector<16x128xf32>
    %72 = tpu.matmul %70, %71, %cst_57 {dimension_numbers = #tpu.dot_dimension_numbers<[1], [0], [0], [1], [0, 0, 1, 1], [], []>} : vector<16x128xf32>, vector<128x128xf32>, vector<16x128xf32> -> vector<16x128xf32>
    %73 = arith.subf %68, %72 : vector<16x128xf32>
    %c0_58 = arith.constant 0 : index
    %c0_59 = arith.constant 0 : index
    %74 = vector.load %arg15[%c0_58, %c0_59] : memref<16x16xf32, #tpu.memory_space<vmem>>, vector<16x16xf32>
    %75 = arith.mulf %73, %73 : vector<16x128xf32>
    %cst_60 = arith.constant dense<0.000000e+00> : vector<16x128xf32>
    %76 = tpu.matmul %74, %75, %cst_60 {dimension_numbers = #tpu.dot_dimension_numbers<[1], [0], [0], [1], [0, 0, 1, 1], [], []>} : vector<16x16xf32>, vector<16x128xf32>, vector<16x128xf32> -> vector<16x128xf32>
    %c0_61 = arith.constant 0 : index
    %c0_62 = arith.constant 0 : index
    %77 = vector.load %arg16[%c0_61, %c0_62] : memref<128x128xf32, #tpu.memory_space<vmem>>, vector<128x128xf32>
    %cst_63 = arith.constant dense<0.000000e+00> : vector<16x128xf32>
    %78 = tpu.matmul %76, %77, %cst_63 {dimension_numbers = #tpu.dot_dimension_numbers<[1], [0], [0], [1], [0, 0, 1, 1], [], []>} : vector<16x128xf32>, vector<128x128xf32>, vector<16x128xf32> -> vector<16x128xf32>
    %cst_64 = arith.constant 9.99999974E-6 : f32
    %79 = vector.broadcast %cst_64 : f32 to vector<16x128xf32>
    %80 = arith.addf %78, %79 : vector<16x128xf32>
    %81 = math.rsqrt %80 : vector<16x128xf32>
    %82 = arith.mulf %73, %81 : vector<16x128xf32>
    %c0_65 = arith.constant 0 : index
    %c0_66 = arith.constant 0 : index
    %83 = vector.load %arg17[%c0_65, %c0_66] : memref<16x128xf32, #tpu.memory_space<vmem>>, vector<16x128xf32>
    %84 = arith.mulf %82, %83 : vector<16x128xf32>
    %c0_67 = arith.constant 0 : index
    %c0_68 = arith.constant 0 : index
    %85 = vector.load %arg18[%c0_67, %c0_68] : memref<16x128xf32, #tpu.memory_space<vmem>>, vector<16x128xf32>
    %86 = arith.addf %84, %85 : vector<16x128xf32>
    %c0_69 = arith.constant 0 : index
    %c0_70 = arith.constant 0 : index
    %87 = vector.load %arg19[%c0_69, %c0_70] : memref<16x128xf32, #tpu.memory_space<vmem>>, vector<16x128xf32>
    tpu.vector_store %arg19[%c0_69, %c0_70], %86 {strides = array<i32>} : memref<16x128xf32, #tpu.memory_space<vmem>>, vector<16x128xf32>,
    return
  }
  func.func @transform_0(%arg0: i32) -> (i32, i32) {
    %c0_i32 = arith.constant 0 : i32
    %c0_i32_0 = arith.constant 0 : i32
    return %arg0, %c0_i32 : i32, i32
  }
  func.func @transform_1(%arg0: i32) -> (i32, i32) {
    %c0_i32 = arith.constant 0 : i32
    %c0_i32_0 = arith.constant 0 : i32
    %c0_i32_1 = arith.constant 0 : i32
    return %c0_i32, %c0_i32_0 : i32, i32
  }
  func.func @transform_2(%arg0: i32) -> (i32, i32) {
    %c0_i32 = arith.constant 0 : i32
    %c0_i32_0 = arith.constant 0 : i32
    %c0_i32_1 = arith.constant 0 : i32
    return %c0_i32, %c0_i32_0 : i32, i32
  }
  func.func @transform_3(%arg0: i32) -> (i32, i32) {
    %c0_i32 = arith.constant 0 : i32
    %c0_i32_0 = arith.constant 0 : i32
    %c0_i32_1 = arith.constant 0 : i32
    return %c0_i32, %c0_i32_0 : i32, i32
  }
  func.func @transform_4(%arg0: i32) -> (i32, i32) {
    %c0_i32 = arith.constant 0 : i32
    %c0_i32_0 = arith.constant 0 : i32
    %c0_i32_1 = arith.constant 0 : i32
    return %c0_i32, %c0_i32_0 : i32, i32
  }
  func.func @transform_5(%arg0: i32) -> (i32, i32) {
    %c0_i32 = arith.constant 0 : i32
    %c0_i32_0 = arith.constant 0 : i32
    %c0_i32_1 = arith.constant 0 : i32
    return %c0_i32, %c0_i32_0 : i32, i32
  }
  func.func @transform_6(%arg0: i32) -> (i32, i32) {
    %c0_i32 = arith.constant 0 : i32
    %c0_i32_0 = arith.constant 0 : i32
    %c0_i32_1 = arith.constant 0 : i32
    return %c0_i32, %c0_i32_0 : i32, i32
  }
  func.func @transform_7(%arg0: i32) -> (i32, i32, i32) {
    %c0_i32 = arith.constant 0 : i32
    %c0_i32_0 = arith.constant 0 : i32
    %c0_i32_1 = arith.constant 0 : i32
    %c0_i32_2 = arith.constant 0 : i32
    return %c0_i32, %c0_i32_0, %c0_i32_1 : i32, i32, i32
  }
  func.func @transform_8(%arg0: i32) -> (i32, i32, i32) {
    %c0_i32 = arith.constant 0 : i32
    %c0_i32_0 = arith.constant 0 : i32
    %c0_i32_1 = arith.constant 0 : i32
    %c0_i32_2 = arith.constant 0 : i32
    return %c0_i32, %c0_i32_0, %c0_i32_1 : i32, i32, i32
  }
  func.func @transform_9(%arg0: i32) -> (i32, i32) {
    %c0_i32 = arith.constant 0 : i32
    %c0_i32_0 = arith.constant 0 : i32
    %c0_i32_1 = arith.constant 0 : i32
    return %c0_i32, %c0_i32_0 : i32, i32
  }
  func.func @transform_10(%arg0: i32) -> (i32, i32) {
    %c0_i32 = arith.constant 0 : i32
    %c0_i32_0 = arith.constant 0 : i32
    %c0_i32_1 = arith.constant 0 : i32
    return %c0_i32, %c0_i32_0 : i32, i32
  }
  func.func @transform_11(%arg0: i32) -> (i32, i32) {
    %c0_i32 = arith.constant 0 : i32
    %c0_i32_0 = arith.constant 0 : i32
    %c0_i32_1 = arith.constant 0 : i32
    return %c0_i32, %c0_i32_0 : i32, i32
  }
  func.func @transform_12(%arg0: i32) -> (i32, i32) {
    %c0_i32 = arith.constant 0 : i32
    %c0_i32_0 = arith.constant 0 : i32
    %c0_i32_1 = arith.constant 0 : i32
    return %c0_i32, %c0_i32_0 : i32, i32
  }
  func.func @transform_13(%arg0: i32) -> (i32, i32) {
    %c0_i32 = arith.constant 0 : i32
    %c0_i32_0 = arith.constant 0 : i32
    %c0_i32_1 = arith.constant 0 : i32
    return %c0_i32, %c0_i32_0 : i32, i32
  }
  func.func @transform_14(%arg0: i32) -> (i32, i32) {
    %c0_i32 = arith.constant 0 : i32
    %c0_i32_0 = arith.constant 0 : i32
    %c0_i32_1 = arith.constant 0 : i32
    return %c0_i32, %c0_i32_0 : i32, i32
  }
  func.func @transform_15(%arg0: i32) -> (i32, i32) {
    %c0_i32 = arith.constant 0 : i32
    %c0_i32_0 = arith.constant 0 : i32
    %c0_i32_1 = arith.constant 0 : i32
    return %c0_i32, %c0_i32_0 : i32, i32
  }
  func.func @transform_16(%arg0: i32) -> (i32, i32) {
    %c0_i32 = arith.constant 0 : i32
    %c0_i32_0 = arith.constant 0 : i32
    %c0_i32_1 = arith.constant 0 : i32
    return %c0_i32, %c0_i32_0 : i32, i32
  }
  func.func @transform_17(%arg0: i32) -> (i32, i32) {
    %c0_i32 = arith.constant 0 : i32
    %c0_i32_0 = arith.constant 0 : i32
    %c0_i32_1 = arith.constant 0 : i32
    return %c0_i32, %c0_i32_0 : i32, i32
  }
  func.func @transform_18(%arg0: i32) -> (i32, i32) {
    %c0_i32 = arith.constant 0 : i32
    %c0_i32_0 = arith.constant 0 : i32
    return %arg0, %c0_i32 : i32, i32
  }
}

</mosaic_0001>

<bundles_post_ra>
// kernel: stconv_block_forward.1
= control target key start
LH: loop header
LB: loop body
LE: loop exit
PB: predicated region body
PF: predicated region fallthrough
CT: control target
= control target key end

     0   :  { %s3687_s0 = inlined_call_operand.vmem [shape: bf16[32,48], index: 0, kind: input, shape index: {}]   ;;  %s3688_s1 = inlined_call_operand.hbm [shape: bf16[48,160], index: 1, kind: input, shape index: {}]   ;;  %s3689_s2 = inlined_call_operand.hbm [shape: f32[1,160], index: 2, kind: input, shape index: {}]   ;;  %s3690_s3 = inlined_call_operand.hbm [shape: bf16[48,160], index: 3, kind: input, shape index: {}]   ;;  %s3691_s4 = inlined_call_operand.hbm [shape: f32[1,160], index: 4, kind: input, shape index: {}]   ;;  %s3692_s5 = inlined_call_operand.vmem [shape: bf16[160,80], index: 5, kind: input, shape index: {}]   ;;  %s3693_s6 = inlined_call_operand.hbm [shape: f32[1,80], index: 6, kind: input, shape index: {}]   ;;  %s3694_s7 = inlined_call_operand.vmem [shape: bf16[3,80,80], index: 7, kind: input, shape index: {}]   ;;  %s3695_s8 = inlined_call_operand.hbm [shape: bf16[2,16,16], index: 8, kind: input, shape index: {}]   ;;  %s3696_s9 = inlined_call_operand.hbm [shape: f32[1,80], index: 9, kind: input, shape index: {}]   ;;  %s3697_s10 = inlined_call_operand.vmem [shape: bf16[80,128], index: 10, kind: input, shape index: {}]   ;;  %s3698_s11 = inlined_call_operand.hbm [shape: f32[1,128], index: 11, kind: input, shape index: {}]   ;;  %s3699_s12 = inlined_call_operand.hbm [shape: bf16[80,128], index: 12, kind: input, shape index: {}]   ;;  %s3700_s13 = inlined_call_operand.hbm [shape: f32[1,128], index: 13, kind: input, shape index: {}]   ;;  %s3701_s14 = inlined_call_operand.hbm [shape: f32[16,16], index: 14, kind: input, shape index: {}]   ;;  %s3702_s15 = inlined_call_operand.vmem [shape: f32[128,128], index: 15, kind: input, shape index: {}]   ;;  %s3703_s16 = inlined_call_operand.hbm [shape: f32[16,128], index: 16, kind: input, shape index: {}]   ;;  %s3704_s17 = inlined_call_operand.hbm [shape: f32[16,128], index: 17, kind: input, shape index: {}]   ;;  %s3705_s18 = inlined_call_operand.vmem [shape: f32[32,128], index: 18, kind: output, shape index: {}]  }
   0x1   :  { %3714 = sst [smem:[#allocation29_spill]] %s3687_s0 }
   0x2   :  { %3715 = sst [smem:[#allocation30_spill]] %s3688_s1 }
   0x3   :  { %3716 = sst [smem:[#allocation31_spill]] %s3689_s2 }
   0x4   :  { %3717 = sst [smem:[#allocation32_spill]] %s3691_s4 }
   0x5   :  { %23 = vsyncpa [#allocation3], 0 }
   0x6   :  { %24 = vsyncpa [#allocation5], 0 }
   0x7   :  { %25 = vsyncpa [#allocation8], 0 }
   0x8   :  { %26 = vsyncpa [#allocation11], 0 }
   0x9   :  { %27 = vsyncpa [#allocation14], 0 }
   0xa   :  { %28 = vsyncpa [#allocation17], 0 }
   0xb   :  { %29 = vsyncpa [#allocation20], 0  ;;  %s3269_s27 = smov 0  }
   0xc LB: > { %s3154_s28 = smov [#allocation4]   ;;  %s3709_s30 = sadd.s32 4294967295, %s3152_s27   ;;  %s3152_s27 = sphi %s3269_s27, %s35_s27  }
   0xd   : > { %s475_s29 = sshll.u32 %s3154_s28, 4  ;;  %p2195_p0 = scmp.ge.s32.totalorder %s3152_s27, 1  ;;  %s476_s29 = int_to_ptr.vmem [resolvable:$true] %s475_s29 }
   0xe   : > { %p449_p1 = scmp.lt.s32.totalorder %s3152_s27, 3  ;;  %p3279_p2 = scmp.eq.s32.totalorder %s3709_s30, 0 }
   0xf   : > { %s3155_s1 = smov [#allocation7]   ;;  %s3156_s21 = smov [#allocation10]  }
  0x10   : > { %s3718_s0 = scalar_select %p3279_p2, 1, 0 }
  0x11   : > { %p3283_p3 = pnand %p2195_p0, %p449_p1  ;;  %s499_s20 = sshll.u32 %s3155_s1, 4  ;;  %s500_s20 = int_to_ptr.vmem [resolvable:$true] %s499_s20 }
  0x12   : > { %s526_s22 = sshll.u32 %s3156_s21, 4  ;;  %s3157_s23 = smov [#allocation13]   ;;  %s3295_s22 = int_to_ptr.vmem [resolvable:$true] %s526_s22 }
  0x13   : > { %s3719_s19 = scalar_select %p3283_p3, 1, 0 }
  0x14   : > { %p2614_p4 = pneg %p3283_p3  ;;  %s3297_s24 = sshll.u32 %s3157_s23, 4  ;;  %s555_s24 = int_to_ptr.vmem [resolvable:$true] %s3297_s24 }
  0x15   : > { %s2791_s26 = scalar_lea.vmem %s476_s29, 32  ;;  %p2799_p10 = scmp.lt.s32.totalorder %s476_s29, %s476_s29 }
  0x16   : > { %p3291_p5 = pnand %p3279_p2, %p2614_p4  ;;  %p2792_p7 = scmp.ne.s32.totalorder %s476_s29, %s2791_s26 }
  0x17   : > { %p2800_p11 = scmp.lt.s32.totalorder %s2791_s26, %s2791_s26 }
  0x18   : > { %p3301_p6 = pneg %p3291_p5 }
  0x19   : > { %p2801_p12 = por %p2800_p11, %p2799_p10 }
  0x1a   : > { %p2794_p8 = pnand %p2792_p7, %p3301_p6 }
  0x1c   : > { %p2795_p9 = pneg %p2794_p8 }
  0x1e   : > { %p2802_p13 = pnand %p2801_p12, %p2795_p9 }
  0x20   : > { %2805 = shalt.err (!%p2802_p13)
}
  0x21   : > { %s3722_s21 = sld [smem:[#allocation31_spill]]  ;;  %s2817_s23 = scalar_lea.vmem %s500_s20, 32 }
  0x22   : > { %p2818_p0 = scmp.ne.s32.totalorder %s500_s20, %s2817_s23  ;;  %p2825_p2 = scmp.lt.s32.totalorder %s500_s20, %s500_s20 }
  0x23   : > { %p2826_p7 = scmp.lt.s32.totalorder %s2817_s23, %s2817_s23 }
  0x24   : > { %p2820_p1 = pnand %p2818_p0, %p3301_p6 }
  0x25   : > { %p2827_p8 = por %p2826_p7, %p2825_p2 }
  0x26   : > { %p2821_p4 = pneg %p2820_p1 }
  0x27   : > { %2620 = dma.hbm_to_vmem [thread:$0]  (!%p3291_p5), %s3722_s21, 32, %s476_s29, [#allocation5]  }
  0x28   : > { %p2828_p3 = pnand %p2827_p8, %p2821_p4 }
  0x2a   : > { %2831 = shalt.err (!%p2828_p3)
}
  0x2b   : > { %s3723_s4 = sld [smem:[#allocation32_spill]]  ;;  %s2843_s29 = scalar_lea.vmem %s3295_s22, 256 }
  0x2c   : > { %p2844_p9 = scmp.ne.s32.totalorder %s3295_s22, %s2843_s29  ;;  %p2851_p12 = scmp.lt.s32.totalorder %s3295_s22, %s3295_s22 }
  0x2d   : > { %p2852_p2 = scmp.lt.s32.totalorder %s2843_s29, %s2843_s29 }
  0x2e   : > { %p2846_p10 = pnand %p2844_p9, %p3301_p6 }
  0x2f   : > { %p2853_p13 = por %p2852_p2, %p2851_p12 }
  0x30   : > { %p2847_p11 = pneg %p2846_p10 }
  0x31   : > { %2626 = dma.hbm_to_vmem [thread:$0]  (!%p3291_p5), %s3723_s4, 32, %s500_s20, [#allocation8]  }
  0x32   : > { %p2854_p3 = pnand %p2853_p13, %p2847_p11 }
  0x34   : > { %2857 = shalt.err (!%p2854_p3)
}
  0x35   : > { %s3710_s28 = smov 64   ;;  %s3711_s30 = smov 4  }
  0x36   : > { %2632 = dma.hbm_to_vmem [thread:$0]  (!%p3291_p5), %s3695_s8, 256, %s3295_s22, [#allocation11], %s3710_s28, %s3710_s28, %s3711_s30  }
  0x37   : > { %s2869_s21 = scalar_lea.vmem %s555_s24, 16  ;;  %s2876_s23 = scalar_lea.vmem %s555_s24, 32 }
  0x38   : > { %p2870_p0 = scmp.ne.s32.totalorder %s555_s24, %s2869_s21  ;;  %p2877_p7 = scmp.lt.s32.totalorder %s555_s24, %s555_s24 }
  0x39   : > { %p2878_p8 = scmp.lt.s32.totalorder %s2876_s23, %s2869_s21 }
  0x3a   : > { %p2872_p1 = pnand %p2870_p0, %p3301_p6 }
  0x3b   : > { %p2879_p9 = por %p2878_p8, %p2877_p7 }
  0x3c   : > { %p2873_p4 = pneg %p2872_p1 }
  0x3e   : > { %p2880_p10 = pnand %p2879_p9, %p2873_p4 }
  0x40   : > { %2883 = shalt.err (!%p2880_p10)
}
  0x41   : > { %2638 = dma.hbm_to_vmem [thread:$0]  (!%p3291_p5), %s3698_s11, 16, %s555_s24, [#allocation14]  }
  0x42   : > { %s3160_s22 = smov [#allocation16]  }
  0x43   : > { %s578_s20 = sshll.u32 %s3160_s22, 4  ;;  %s579_s20 = int_to_ptr.vmem [resolvable:$true] %s578_s20 }
  0x44   : > { %s2895_s1 = scalar_lea.vmem %s579_s20, 16  ;;  %s2902_s28 = scalar_lea.vmem %s579_s20, 32 }
  0x45   : > { %p2896_p11 = scmp.ne.s32.totalorder %s579_s20, %s2895_s1  ;;  %p2903_p13 = scmp.lt.s32.totalorder %s579_s20, %s579_s20 }
  0x46   : > { %p2904_p3 = scmp.lt.s32.totalorder %s2902_s28, %s2895_s1 }
  0x47   : > { %p2898_p12 = pnand %p2896_p11, %p3301_p6 }
  0x48   : > { %p2905_p0 = por %p2904_p3, %p2903_p13 }
  0x49   : > { %p2899_p2 = pneg %p2898_p12 }
  0x4b   : > { %p2906_p1 = pnand %p2905_p0, %p2899_p2 }
  0x4d   : > { %2909 = shalt.err (!%p2906_p1)
}
  0x4e   : > { %2644 = dma.hbm_to_vmem [thread:$0]  (!%p3291_p5), %s3700_s13, 16, %s579_s20, [#allocation17]  }
  0x4f   : > { %s3161_s24 = smov [#allocation19]   ;;  %s3162_s29 = smov [#allocation2]  }
  0x50   : > { %s604_s26 = sshll.u32 %s3161_s24, 4  ;;  %s461_s22 = sshll.u32 %s3162_s29, 4  ;;  %s605_s26 = int_to_ptr.vmem [resolvable:$true] %s604_s26  ;;  %s462_s22 = int_to_ptr.vmem [resolvable:$true] %s461_s22 }
  0x51   : > { %s2921_s30 = scalar_lea.vmem %s605_s26, 256  ;;  %p2929_p9 = scmp.lt.s32.totalorder %s605_s26, %s605_s26 }
  0x52   : > { %p2922_p4 = scmp.ne.s32.totalorder %s605_s26, %s2921_s30  ;;  %p2930_p10 = scmp.lt.s32.totalorder %s2921_s30, %s2921_s30 }
  0x54   : > { %p2924_p7 = pnand %p2922_p4, %p3301_p6  ;;  %p2931_p11 = por %p2930_p10, %p2929_p9 }
  0x56   : > { %p2925_p8 = pneg %p2924_p7 }
  0x58   : > { %p2932_p12 = pnand %p2931_p11, %p2925_p8 }
  0x5a   : > { %2935 = shalt.err (!%p2932_p12)
}
  0x5b   : > { %s3712_s28 = smov 128   ;;  %s3164_s20 = smov 8  }
  0x5c   : > { %2650 = dma.hbm_to_vmem [thread:$0]  (!%p3291_p5), %s3703_s16, 256, %s605_s26, [#allocation20], %s3712_s28, %s3712_s28, %s3164_s20  }
  0x5d   : > { %s2947_s23 = scalar_lea.vmem %s462_s22, 768  ;;  %p2955_p0 = scmp.lt.s32.totalorder %s462_s22, %s462_s22 }
  0x5e   : > { %p2948_p2 = scmp.ne.s32.totalorder %s462_s22, %s2947_s23  ;;  %p2956_p1 = scmp.lt.s32.totalorder %s2947_s23, %s2947_s23 }
  0x60   : > { %p2950_p13 = pnand %p2948_p2, %p3301_p6  ;;  %p2957_p4 = por %p2956_p1, %p2955_p0 }
  0x62   : > { %p2951_p3 = pneg %p2950_p13 }
  0x64   : > { %p2958_p7 = pnand %p2957_p4, %p2951_p3 }
  0x66   : > { %2961 = shalt.err (!%p2958_p7)
}
  0x67   : > { %s3724_s29 = sld [smem:[#allocation30_spill]]  ;;  %s3165_s26 = smov [#allocation6]  }
  0x68   : > { %s485_s1 = sshll.u32 %s3165_s26, 4  ;;  %s3166_s21 = smov [#allocation9]   ;;  %s486_s1 = int_to_ptr.vmem [resolvable:$true] %s485_s1 }
  0x69   : > { %s513_s4 = sshll.u32 %s3166_s21, 4  ;;  %s2973_s23 = scalar_lea.vmem %s486_s1, 768  ;;  %s514_s4 = int_to_ptr.vmem [resolvable:$true] %s513_s4 }
  0x6a   : > { %p2974_p8 = scmp.ne.s32.totalorder %s486_s1, %s2973_s23  ;;  %p2981_p11 = scmp.lt.s32.totalorder %s486_s1, %s486_s1 }
  0x6b   : > { %p2982_p12 = scmp.lt.s32.totalorder %s2973_s23, %s2973_s23 }
  0x6c   : > { %p2976_p9 = pnand %p2974_p8, %p3301_p6 }
  0x6d   : > { %2617 = dma.hbm_to_vmem [thread:$0]  (!%p3291_p5), %s3724_s29, 768, %s462_s22, [#allocation3], %s3712_s28, %s3712_s28, %s3164_s20  }
  0x6e   : > { %p2977_p10 = pneg %p2976_p9  ;;  %p2983_p2 = por %p2982_p12, %p2981_p11 }
  0x70   : > { %p2984_p13 = pnand %p2983_p2, %p2977_p10 }
  0x72   : > { %2987 = shalt.err (!%p2984_p13)
}
  0x73   : > { %2623 = dma.hbm_to_vmem [thread:$0]  (!%p3291_p5), %s3690_s3, 768, %s486_s1, [#allocation5], %s3712_s28, %s3712_s28, %s3164_s20  }
  0x74   : > { %s2999_s24 = scalar_lea.vmem %s514_s4, 16  ;;  %s3006_s29 = scalar_lea.vmem %s514_s4, 32 }
  0x75   : > { %p3000_p3 = scmp.ne.s32.totalorder %s514_s4, %s2999_s24  ;;  %p3007_p4 = scmp.lt.s32.totalorder %s514_s4, %s514_s4 }
  0x76   : > { %p3008_p7 = scmp.lt.s32.totalorder %s3006_s29, %s2999_s24 }
  0x77   : > { %p3002_p0 = pnand %p3000_p3, %p3301_p6 }
  0x78   : > { %p3009_p8 = por %p3008_p7, %p3007_p4 }
  0x79   : > { %p3003_p1 = pneg %p3002_p0 }
  0x7b   : > { %p3010_p9 = pnand %p3009_p8, %p3003_p1 }
  0x7d   : > { %3013 = shalt.err (!%p3010_p9)
}
  0x7e   : > { %2629 = dma.hbm_to_vmem [thread:$0]  (!%p3291_p5), %s3693_s6, 16, %s514_s4, [#allocation8]  }
  0x7f   : > { %s3167_s23 = smov [#allocation12]   ;;  %s3168_s22 = smov [#allocation15]  }
  0x80   : > { %s540_s1 = sshll.u32 %s3167_s23, 4  ;;  %s564_s30 = sshll.u32 %s3168_s22, 4  ;;  %s541_s1 = int_to_ptr.vmem [resolvable:$true] %s540_s1  ;;  %s565_s30 = int_to_ptr.vmem [resolvable:$true] %s564_s30 }
  0x81   : > { %s3025_s28 = scalar_lea.vmem %s541_s1, 16  ;;  %s3032_s24 = scalar_lea.vmem %s541_s1, 32 }
  0x82   : > { %p3026_p10 = scmp.ne.s32.totalorder %s541_s1, %s3025_s28  ;;  %p3033_p2 = scmp.lt.s32.totalorder %s541_s1, %s541_s1 }
  0x83   : > { %p3034_p13 = scmp.lt.s32.totalorder %s3032_s24, %s3025_s28 }
  0x84   : > { %p3028_p11 = pnand %p3026_p10, %p3301_p6 }
  0x85   : > { %p3035_p3 = por %p3034_p13, %p3033_p2 }
  0x86   : > { %p3029_p12 = pneg %p3028_p11 }
  0x88   : > { %p3036_p0 = pnand %p3035_p3, %p3029_p12 }
  0x8a   : > { %3039 = shalt.err (!%p3036_p0)
}
  0x8b   : > { %2635 = dma.hbm_to_vmem [thread:$0]  (!%p3291_p5), %s3696_s9, 16, %s541_s1, [#allocation11]  }
  0x8c   : > { %s3051_s26 = scalar_lea.vmem %s565_s30, 640  ;;  %p3059_p8 = scmp.lt.s32.totalorder %s565_s30, %s565_s30 }
  0x8d   : > { %p3052_p1 = scmp.ne.s32.totalorder %s565_s30, %s3051_s26  ;;  %p3060_p9 = scmp.lt.s32.totalorder %s3051_s26, %s3051_s26 }
  0x8f   : > { %p3054_p4 = pnand %p3052_p1, %p3301_p6  ;;  %p3061_p10 = por %p3060_p9, %p3059_p8 }
  0x91   : > { %p3055_p7 = pneg %p3054_p4 }
  0x93   : > { %p3062_p11 = pnand %p3061_p10, %p3055_p7 }
  0x95   : > { %3065 = shalt.err (!%p3062_p11)
}
  0x96   : > { %s3725_s28 = smov 4   ;;  %s3726_s21 = smov 64  }
  0x97   : > { %2641 = dma.hbm_to_vmem [thread:$0]  (!%p3291_p5), %s3699_s12, 640, %s565_s30, [#allocation14], %s3726_s21, %s3726_s21, %s3725_s28  }
  0x98   : > { %s3169_s1 = smov [#allocation18]   ;;  %s3170_s4 = smov [#allocation21]  }
  0x99   : > { %s588_s24 = sshll.u32 %s3169_s1, 4  ;;  %s617_s29 = sshll.u32 %s3170_s4, 4  ;;  %s589_s24 = int_to_ptr.vmem [resolvable:$true] %s588_s24  ;;  %s618_s29 = int_to_ptr.vmem [resolvable:$true] %s617_s29 }
  0x9a   : > { %s3077_s26 = scalar_lea.vmem %s589_s24, 256  ;;  %p3085_p3 = scmp.lt.s32.totalorder %s589_s24, %s589_s24 }
  0x9b   : > { %p3078_p12 = scmp.ne.s32.totalorder %s589_s24, %s3077_s26  ;;  %p3086_p0 = scmp.lt.s32.totalorder %s3077_s26, %s3077_s26 }
  0x9d   : > { %p3080_p2 = pnand %p3078_p12, %p3301_p6  ;;  %p3087_p1 = por %p3086_p0, %p3085_p3 }
  0x9f   : > { %p3081_p13 = pneg %p3080_p2 }
  0xa1   : > { %p3088_p4 = pnand %p3087_p1, %p3081_p13 }
  0xa3   : > { %3091 = shalt.err (!%p3088_p4)
}
  0xa4   : > { %s3727_s30 = smov 128   ;;  %s3103_s23 = scalar_lea.vmem %s618_s29, 256 }
  0xa5   : > { %2647 = dma.hbm_to_vmem [thread:$0]  (!%p3291_p5), %s3701_s14, 256, %s589_s24, [#allocation17], %s3727_s30, %s3727_s30, %s3164_s20  }
  0xa6   : > { %p3104_p7 = scmp.ne.s32.totalorder %s618_s29, %s3103_s23  ;;  %p3111_p10 = scmp.lt.s32.totalorder %s618_s29, %s618_s29 }
  0xa7   : > { %p3112_p11 = scmp.lt.s32.totalorder %s3103_s23, %s3103_s23 }
  0xa8   : > { %p3106_p8 = pnand %p3104_p7, %p3301_p6 }
  0xa9   : > { %p3113_p12 = por %p3112_p11, %p3111_p10 }
  0xaa   : > { %p3107_p9 = pneg %p3106_p8 }
  0xac   : > { %p3114_p2 = pnand %p3113_p12, %p3107_p9 }
  0xae   : > { %3117 = shalt.err (!%p3114_p2)
}
  0xaf   : > { %2653 = dma.hbm_to_vmem [thread:$0]  (!%p3291_p5), %s3704_s17, 256, %s618_s29, [#allocation20], %s3727_s30, %s3727_s30, %s3164_s20  }
  0xb0   : > { %p3728_p13 = scmp.ne.s32.totalorder %s3719_s19, 0 }
  0xb1   : > { %p3729_p6 = scmp.ne.s32.totalorder (!%p3728_p13), %s3718_s0, 0 }
  0xb2   : > { %642 = sbr.rel (%p3728_p13) target bundleno = 2114 (0x842), region = 92 }
  0xb7   : > { %3123 = dma.done.wait (%p3729_p6), [#allocation3], 768  }
  0xb8   : > { %3125 = vsyncadd (%p3729_p6), [#allocation3], 4294966528 }
  0xb9   : > { %3127 = dma.done.wait (%p3729_p6), [#allocation5], 800  }
  0xba   : > { %3129 = vsyncadd (%p3729_p6), [#allocation5], 4294966496 }
  0xbb   : > { %3131 = dma.done.wait (%p3729_p6), [#allocation8], 48  }
  0xbc   : > { %3133 = vsyncadd (%p3729_p6), [#allocation8], 4294967248 }
  0xbd   : > { %3135 = dma.done.wait (%p3729_p6), [#allocation11], 272  }
  0xbe   : > { %3137 = vsyncadd (%p3729_p6), [#allocation11], 4294967024 }
  0xbf   : > { %3139 = dma.done.wait (%p3729_p6), [#allocation14], 656  }
  0xc0   : > { %3141 = vsyncadd (%p3729_p6), [#allocation14], 4294966640 }
  0xc1   : > { %3143 = dma.done.wait (%p3729_p6), [#allocation17], 272  }
  0xc2   : > { %3145 = vsyncadd (%p3729_p6), [#allocation17], 4294967024 }
  0xc3   : > { %3147 = dma.done.wait (%p3729_p6), [#allocation20], 512  }
  0xc4   : > { %3149 = vsyncadd (%p3729_p6), [#allocation20], 4294966784  ;;  %s3730_s19 = sadd.s32 4294967295, %s3152_s27   ;;  %v3171_v0 = vmov 0   ;;  %v2708_v1 = vld [vmem:[#allocation2 + $0x24] ss:$8 sps:$4 sm:$0xff]   ;;  %v767_v24 = vlaneseq }
  0xc5   : > { %s2224_s2 = sshll.u32 %s3730_s19, 1  ;;  %848 = vmatprep.mubr.bf16.mxu1 %v3171_v0  ;;  %1063 = vmatprep.subr.bf16.mxu0 %v3171_v0  ;;  %v2710_v2 = vld [vmem:[#allocation2 + $0x20] ss:$8 sps:$4 sm:$0xff]   ;;  %v2711_v3 = vld [vmem:[#allocation2 + $0x14] ss:$8 sps:$4 sm:$0xff]   ;;  %s3731_s24 = sld [smem:[#allocation29_spill]] }
  0xc6   : > { %p745_p5 = scmp.lt.s32.totalorder %s2224_s2, 3  ;;  %826 = vmatprep.subr.bf16.mxu1 %v2708_v1  ;;  %v2713_v4 = vld [vmem:[#allocation2 + $0x10] ss:$8 sps:$4 sm:$0xff]   ;;  %v2714_v5 = vld [vmem:[#allocation2 + $0x4] ss:$8 sps:$4 sm:$0xff]   ;;  %vm812_vm0 = vcmask 392192  }
  0xc7   : > { %827 = vmatpush1.bf16.msra.mxu1 %v2710_v2  ;;  %v2716_v6 = vld [vmem:[#allocation2] ss:$8 sps:$4 sm:$0xff]   ;;  %v2718_v9 = vld [vmem:[#allocation6 + $0x20] ss:$8 sps:$4 sm:$0xff]   ;;  %v768_v27 = vshrl.u32 %v767_v24, 7  ;;  %vm1059_vm1 = vcmask 261120  }
  0xc8   : > { %s3733_s2 = smov (!%p745_p5, %s2224_s2), 3  ;;  %828 = vmatprep.subr.bf16.mxu1 %v2711_v3  ;;  %v2720_v8 = vld [vmem:[#allocation6 + $0x24] ss:$8 sps:$4 sm:$0xff]   ;;  %v2723_v10 = vld [vmem:[#allocation6 + $0x14] ss:$8 sps:$4 sm:$0xff]   ;;  %vm3173_vm2 = vmmov 0  }
  0xc9   : > { %s2225_s25 = sshll.u32 %s3733_s2, 2  ;;  %v2721_v11 = vld [vmem:[#allocation6 + $0x10] ss:$8 sps:$4 sm:$0xff]   ;;  %v2726_v12 = vld [vmem:[#allocation6 + $0x4] ss:$8 sps:$4 sm:$0xff]   ;;  %v769_v30 = vsub.s32 0, %v768_v27 }
  0xca   : > { %v2724_v13 = vld [vmem:[#allocation6] ss:$8 sps:$4 sm:$0xff]   ;;  %v2729_v16 = vld [vmem:[%s3692_s5 + $0x28] sm:$0xff]   ;;  %v2730_v17 = vld [vmem:[%s3692_s5 + $0x20] sm:$0xff]   ;;  %v773_v31 = vsub.s32 1, %v768_v27  ;;  %vm1122_vm3 = vcmask 130048  }
  0xcb   : > { %s748_s4 = scalar_lea.vmem %s3731_s24, %s2225_s25  ;;  %829 = vmatpush1.bf16.msra.mxu1 %v2713_v4  ;;  %v2727_v14 = vld [vmem:[%s3692_s5 + $0x38] sm:$0xff]   ;;  %v2728_v15 = vld [vmem:[%s3692_s5 + $0x30] sm:$0xff]   ;;  %v2733_v20 = vld [vmem:[%s3692_s5 + $0x8] sm:$0xff]   ;;  %vm1209_vm4 = vcmask 654336   ;;  %s2227_s19 = sshll.u32 %s3733_s2, 3 }
  0xcc   : > { %830 = vmatprep.subr.bf16.mxu1 %v2714_v5  ;;  %v2717_v7 = vld [vmem:[%s748_s4] sm:$0xff]   ;;  %1064 = vmatpush1.bf16.msra.mxu0 %v2727_v14  ;;  %v2731_v18 = vld [vmem:[%s3692_s5 + $0x18] sm:$0xff]   ;;  %v2732_v19 = vld [vmem:[%s3692_s5 + $0x10] sm:$0xff]   ;;  %s754_s0 = scalar_lea.vmem %s3705_s18, %s2227_s19 }
  0xcd   : > { %1065 = vmatprep.subr.bf16.mxu0 %v3171_v0  ;;  %v2734_v21 = vld [vmem:[%s3692_s5] sm:$0xff]   ;;  %v2735_v22 = vld [vmem:[%s3692_s5 + $0x48] sm:$0xff]   ;;  %v765_v49 = vld [vmem:[#allocation4] sm:$0x3] }
  0xce   : > { %v2736_v23 = vld [vmem:[%s3692_s5 + $0x40] sm:$0xff]   ;;  %v774_v53 = vrot.slane %v765_v49, %v773_v31  ;;  %v770_v56 = vrot.slane %v765_v49, %v769_v30  ;;  %v2744_v24 = vld [vmem:[%s3694_s7 + $0x28] sm:$0xff]   ;;  %v2749_v27 = vld [vmem:[%s3694_s7 + $0x58] sm:$0xff]  }
  0xcf   : > { %831 = vmatpush1.bf16.msra.mxu1 %v2716_v6  ;;  %v865_v29 = vld [vmem:[#allocation7] sm:$0x3]  ;;  %v2759_v49 = vld [vmem:[#allocation15 + $0x10] sm:$0xff]  }
  0xd0   : > { %917 = vmatprep.subr.bf16.mxu1 %v2720_v8  ;;  %1066 = vmatpush1.bf16.msra.mxu0 %v2728_v15  ;;  %v870_v32 = vrot.slane %v865_v29, %v769_v30  ;;  %v874_v34 = vrot.slane %v865_v29, %v773_v31  ;;  %v3172_v8 = vmov 0.0  }
  0xd1   : > { %1067 = vmatprep.subr.bf16.mxu0 %v3171_v0 }
  0xd2   : > { %2235 = vmatmul.mubr.msk.bf16.vlgmr.msra.gmra.mxu1 %vm812_vm0, %v2717_v7 }
  0xd3   : > { %918 = vmatpush1.bf16.msra.mxu1 %v2718_v9  ;;  %939 = vmatprep.mubr.bf16.mxu1 %v3171_v0 }
  0xd4   : > { %919 = vmatprep.subr.bf16.mxu1 %v2723_v10  ;;  %1068 = vmatpush1.bf16.msra.mxu0 %v2729_v16  ;;  %v2243_v10 = vld [vmem:[#allocation9] ss:$0 sm:$0xff] }
  0xd5   : > { %1069 = vmatprep.subr.bf16.mxu0 %v3171_v0 }
  0xd7   : > { %920 = vmatpush1.bf16.msra.mxu1 %v2721_v11 }
  0xd8   : > { %921 = vmatprep.subr.bf16.mxu1 %v2726_v12  ;;  %1070 = vmatpush1.bf16.msra.mxu0 %v2730_v17  ;;  %v2737_v17 = vld [vmem:[#allocation10] sm:$0xff]  }
  0xd9   : > { %1071 = vmatprep.subr.bf16.mxu0 %v3171_v0 }
  0xdb   : > { %922 = vmatpush1.bf16.msra.mxu1 %v2724_v13 }
  0xdc   : > { %1072 = vmatpush1.bf16.msra.mxu0 %v2731_v18  ;;  %2396 = vmatprep.subr.bf16.mxu1 %v3172_v8  ;;  %v2738_v18 = vld [vmem:[#allocation10 + $0x8] sm:$0xff]  }
  0xdd   : > { %1073 = vmatprep.subr.bf16.mxu0 %v3171_v0 }
  0xde   : > { %2242 = vmatmul.mubr.msk.bf16.vlgmr.msra.gmra.mxu1 %vm812_vm0, %v2717_v7 }
  0xdf   : > { %2398 = vmatprep.mubr.msk.bf16.mxu1 %vm3173_vm2, %v3172_v8 }
  0xe0   : > { %1074 = vmatpush1.bf16.msra.mxu0 %v2732_v19  ;;  %v2739_v19 = vld [vmem:[%s3694_s7 + $0x48] sm:$0xff]  }
  0xe1   : > { %1075 = vmatprep.subr.bf16.mxu0 %v3171_v0 }
  0xe4   : > { %1076 = vmatpush1.bf16.msra.mxu0 %v2733_v20  ;;  %v2743_v20 = vld [vmem:[%s3694_s7 + $0x70] sm:$0xff]  }
  0xe5   : > { %1077 = vmatprep.subr.bf16.mxu0 %v3171_v0 }
  0xe8   : > { %1078 = vmatpush1.bf16.msra.mxu0 %v2734_v21  ;;  %v2740_v21 = vld [vmem:[%s3694_s7 + $0x40] sm:$0xff]  }
  0xe9   : > { %1091 = vmatprep.subr.bf16.mxu0 %v3171_v0 }
  0xec   : > { %1092 = vmatpush2.bf16.msra.mxu0 %v2735_v22  ;;  %v2741_v22 = vld [vmem:[%s3694_s7 + $0x38] sm:$0xff]  }
  0xed   : > { %1093 = vmatprep.subr.bf16.mxu0 %v3171_v0 }
  0xf0   : > { %1094 = vmatpush2.bf16.msra.mxu0 %v2736_v23  ;;  %v2742_v23 = vld [vmem:[%s3694_s7 + $0x30] sm:$0xff]  }
  0xf1   : > { %2430 = vmatprep.subr.bf16.mxu0 %v3172_v8 }
 0x192   : > { %v850_v25 = vpop.f32.mrf.mxu1 }
 0x193   : > { %v851_v1 = vadd.f32 %v850_v25, %v770_v56  ;;  %v2745_v25 = vld [vmem:[%s3694_s7 + $0x68] sm:$0xff]  }
 0x194   : > { %v852_v26 = vpop.f32.mrf.mxu1 }
 0x195   : > { %v853_v62 = vadd.f32 %v852_v26, %v774_v53  ;;  %v2747_v26 = vld [vmem:[%s3694_s7 + $0x60] sm:$0xff]  }
 0x196   : > { %v854_v28 = vpop.f32.mrf.mxu1 }
 0x197   : > { %v855_v60 = vadd.f32 %v854_v28, %v770_v56  ;;  %v2751_v28 = vld [vmem:[%s3694_s7 + $0x50] sm:$0xff]  }
 0x198   : > { %v856_v33 = vpop.f32.mrf.mxu1 }
 0x199   : > { %v857_v63 = vadd.f32 %v856_v33, %v774_v53  ;;  %v2763_v53 = vld [vmem:[#allocation15] sm:$0xff]  }
 0x19e   : > { %v941_v35 = vpop.f32.mrf.mxu1 }
 0x19f   : > { %v942_v36 = vadd.f32 %v941_v35, %v870_v32 }
 0x1a0   : > { %v943_v37 = vpop.f32.mrf.mxu1 }
 0x1a1   : > { %v950_v38 = vmul.f32 0.5, %v942_v36  ;;  %v944_v39 = vadd.f32 %v943_v37, %v874_v34 }
 0x1a2   : > { %v945_v40 = vpop.f32.mrf.mxu1 }
 0x1a3   : > { %v951_v41 = vmul.f32 0.5, %v944_v39  ;;  %v946_v42 = vadd.f32 %v945_v40, %v870_v32  ;;  %2764 = vtanh.f32 %v950_v38  ;;  %v2748_v40 = vld [vmem:[%s3694_s7 + $0x18] sm:$0xff]  }
 0x1a4   : > { %v947_v43 = vpop.f32.mrf.mxu1 }
 0x1a5   : > { %2766 = vtanh.f32 %v951_v41  ;;  %v952_v44 = vmul.f32 0.5, %v946_v42  ;;  %v948_v45 = vadd.f32 %v947_v43, %v874_v34  ;;  %v2746_v34 = vld [vmem:[%s3694_s7 + $0x20] sm:$0xff]   ;;  %v2750_v41 = vld [vmem:[%s3694_s7 + $0x10] sm:$0xff]   ;;  %v2752_v42 = vld [vmem:[%s3694_s7 + $0x8] sm:$0xff]  }
 0x1a6   : > { %v2753_v43 = vld [vmem:[%s3694_s7] sm:$0xff]  }
 0x1a7   : > { %2768 = vtanh.f32 %v952_v44  ;;  %v953_v46 = vmul.f32 0.5, %v948_v45  ;;  %v2754_v44 = vld [vmem:[%s3697_s10 + $0x20] sm:$0xff]  }
 0x1a8   : > { %v2755_v45 = vld [vmem:[#allocation15 + $0x20] sm:$0xff]  }
 0x1a9   : > { %2770 = vtanh.f32 %v953_v46  ;;  %v2756_v46 = vld [vmem:[%s3697_s10 + $0x18] sm:$0xff]  }
 0x1b0   : > { %v2765_v47 = vpop.eup %2764 }
 0x1b1   : > { %v958_v52 = vmul.f32 0.5, %v2765_v47  ;;  %v2757_v47 = vld [vmem:[#allocation15 + $0x18] sm:$0xff]  }
 0x1b2   : > { %v2767_v48 = vpop.eup %2766 }
 0x1b3   : > { %v959_v50 = vmul.f32 0.5, %v2767_v48  ;;  %v962_v61 = vadd.f32 0.5, %v958_v52  ;;  %v2758_v48 = vld [vmem:[%s3697_s10 + $0x10] sm:$0xff]   ;;  %v2762_v52 = vld [vmem:[%s3697_s10] sm:$0xff]  }
 0x1b4   : > { %v2769_v51 = vpop.eup %2768 }
 0x1b5   : > { %v960_v54 = vmul.f32 0.5, %v2769_v51  ;;  %v963_v59 = vadd.f32 0.5, %v959_v50  ;;  %v966_v5 = vmul.f32 %v962_v61, %v851_v1  ;;  %v2760_v50 = vld [vmem:[%s3697_s10 + $0x8] sm:$0xff]  }
 0x1b6   : > { %v2771_v55 = vpop.eup %2770  ;;  %v2761_v51 = vld [vmem:[#allocation15 + $0x8] sm:$0xff]  }
 0x1b7   : > { %v964_v57 = vadd.f32 0.5, %v960_v54  ;;  %v961_v58 = vmul.f32 0.5, %v2771_v55  ;;  %v967_v3 = vmul.f32 %v963_v59, %v853_v62 }
 0x1b9   : > { %v965_v0 = vadd.f32 0.5, %v961_v58  ;;  %v968_v2 = vmul.f32 %v964_v57, %v855_v60 }
 0x1bb   : > { %v969_v4 = vmul.f32 %v965_v0, %v857_v63  ;;  %v970_v7 = vpack.c.bf16 %v968_v2, %v966_v5  ;;  %v2297_v2 = vld [vmem:[#allocation12] ss:$0 sm:$0xff] }
 0x1bd   : > { %v971_v6 = vpack.c.bf16 %v969_v4, %v967_v3 }
 0x1bf   : > { %2254 = vmatprep.mubr.msk.bf16.mxu0 %vm1059_vm1, %v971_v6 }
 0x1c0   : > { %1096 = vmatmul.mubr.bf16.vlgmr.msra.gmra.mxu0 %v970_v7 }
 0x1c1   : > { %2432 = vmatprep.mubr.msk.bf16.mxu0 %vm3173_vm2, %v3172_v8 }
 0x280   : > { %v1097_v9 = vpop.f32.mrf.mxu0 }
 0x281   : > { %v1098_v13 = vadd.f32 %v2243_v10, %v1097_v9 }
 0x282   : > { %v1099_v11 = vpop.f32.mrf.mxu0 }
 0x284   : > { %v1100_v12 = vpop.f32.mrf.mxu0 }
 0x285   : > { %v1101_v14 = vadd.f32 %v2243_v10, %v1100_v12  ;;  %v1669_v12 = vld [vmem:[#allocation18] sm:$0xff] }
 0x286   : > { %v1102_v15 = vpop.f32.mrf.mxu0 }
 0x287   : > { %v3499_v16 = vpack.c.bf16 %v1101_v14, %v1098_v13  ;;  %v2305_v13 = vld [vmem:[#allocation16] ss:$0 sm:$0xff] }
 0x289   : > { %2397 = vmatpush3.bf16.msra.mxu1 %v3499_v16  ;;  %2431 = vmatpush3.bf16.msra.mxu0 %v3499_v16 }
 0x28a   : > { %2402 = vmatprep.subr.bf16.mxu1 %v3172_v8  ;;  %2436 = vmatprep.subr.bf16.mxu0 %v3172_v8 }
 0x28c   : > { %2399 = vmatmul.mubr.msk.bf16.vlgmr.msra.gmra.mxu1 %vm1122_vm3, %v2737_v17  ;;  %2433 = vmatmul.mubr.msk.bf16.vlgmr.msra.gmra.mxu0 %vm1122_vm3, %v2738_v18 }
 0x28d   : > { %2403 = vmatpush3.bf16.msra.mxu1 %v2739_v19  ;;  %2437 = vmatpush3.bf16.msra.mxu0 %v2743_v20 }
 0x28e   : > { %2404 = vmatprep.subr.bf16.mxu1 %v3172_v8  ;;  %2438 = vmatprep.subr.bf16.mxu0 %v3172_v8 }
 0x28f   : > { %2412 = vmatprep.mubr.msk.bf16.mxu1 %vm3173_vm2, %v3172_v8  ;;  %2446 = vmatprep.mubr.msk.bf16.mxu0 %vm3173_vm2, %v3172_v8 }
 0x291   : > { %2405 = vmatpush3.bf16.msra.mxu1 %v2740_v21  ;;  %2439 = vmatpush3.bf16.msra.mxu0 %v2745_v25 }
 0x292   : > { %2406 = vmatprep.subr.bf16.mxu1 %v3172_v8  ;;  %2440 = vmatprep.subr.bf16.mxu0 %v3172_v8 }
 0x295   : > { %2407 = vmatpush3.bf16.msra.mxu1 %v2741_v22  ;;  %2441 = vmatpush3.bf16.msra.mxu0 %v2747_v26 }
 0x296   : > { %2408 = vmatprep.subr.bf16.mxu1 %v3172_v8  ;;  %2442 = vmatprep.subr.bf16.mxu0 %v3172_v8 }
 0x299   : > { %2409 = vmatpush3.bf16.msra.mxu1 %v2742_v23  ;;  %2443 = vmatpush3.bf16.msra.mxu0 %v2749_v27 }
 0x29a   : > { %2410 = vmatprep.subr.bf16.mxu1 %v3172_v8  ;;  %2444 = vmatprep.subr.bf16.mxu0 %v3172_v8 }
 0x29d   : > { %2411 = vmatpush3.bf16.msra.mxu1 %v2744_v24  ;;  %2445 = vmatpush3.bf16.msra.mxu0 %v2751_v28 }
 0x29e   : > { %2416 = vmatprep.subr.bf16.mxu1 %v3172_v8  ;;  %2464 = vmatprep.subr.bf16.mxu0 %v3172_v8 }
 0x34c   : > { %v1160_v29 = vpop.f32.mrf.mxu1  ;;  %v1373_v30 = vpop.f32.mrf.mxu0 }
 0x34e   : > { %v2400_v31 = vpop.f32.mrf.mxu1  ;;  %v2434_v32 = vpop.f32.mrf.mxu0 }
 0x350   : > { %v1163_v33 = vpop.f32.mrf.mxu1  ;;  %v1376_v35 = vpop.f32.mrf.mxu0 }
 0x351   : > { %v1167_v36 = vpack.c.bf16 %v1163_v33, %v1160_v29  ;;  %v1380_v37 = vpack.c.bf16 %v1376_v35, %v1373_v30  ;;  %v2298_v30 = vld [vmem:[#allocation13] ss:$0 sm:$0xff] }
 0x352   : > { %v2401_v38 = vpop.f32.mrf.mxu1  ;;  %v2435_v39 = vpop.f32.mrf.mxu0 }
 0x353   : > { %2413 = vmatmul.mubr.msk.bf16.vlgmr.msra.gmra.mxu1 %vm1209_vm4, %v1167_v36  ;;  %2447 = vmatmul.mubr.msk.bf16.vlgmr.msra.gmra.mxu0 %vm1209_vm4, %v1380_v37  ;;  %v3608_v37 = vld [vmem:[#allocation18 + $0x8] sm:$0xff]  ;;  %v3613_v38 = vld [vmem:[%s3702_s15 + $0x78] sm:$0xff] }
 0x354   : > { %2417 = vmatpush3.bf16.msra.mxu1 %v2746_v34  ;;  %2426 = vmatprep.mubr.msk.bf16.mxu1 %vm3173_vm2, %v3172_v8  ;;  %v3618_v39 = vld [vmem:[%s3702_s15 + $0x70] sm:$0xff] }
 0x355   : > { %2418 = vmatprep.subr.bf16.mxu1 %v3172_v8  ;;  %2474 = vmatprep.mubr.msk.bf16.mxu0 %vm3173_vm2, %v3172_v8 }
 0x356   : > { %2465 = vmatpush3.bf16.msra.mxu0 %v2755_v45  ;;  %v1760_v45 = vld [vmem:[%s3702_s15 + $0x40] sm:$0xff] }
 0x357   : > { %2466 = vmatprep.subr.bf16.mxu0 %v3172_v8 }
 0x358   : > { %2419 = vmatpush3.bf16.msra.mxu1 %v2748_v40  ;;  %v3627_v40 = vld [vmem:[%s3702_s15 + $0x68] sm:$0xff] }
 0x359   : > { %2420 = vmatprep.subr.bf16.mxu1 %v3172_v8 }
 0x35a   : > { %2467 = vmatpush3.bf16.msra.mxu0 %v2757_v47  ;;  %v1758_v47 = vld [vmem:[%s3702_s15 + $0x30] sm:$0xff] }
 0x35b   : > { %2468 = vmatprep.subr.bf16.mxu0 %v3172_v8 }
 0x35c   : > { %2421 = vmatpush3.bf16.msra.mxu1 %v2750_v41  ;;  %v1764_v41 = vld [vmem:[%s3702_s15 + $0x60] sm:$0xff] }
 0x35d   : > { %2422 = vmatprep.subr.bf16.mxu1 %v3172_v8 }
 0x35e   : > { %2469 = vmatpush3.bf16.msra.mxu0 %v2759_v49  ;;  %v1756_v49 = vld [vmem:[%s3702_s15 + $0x20] sm:$0xff] }
 0x35f   : > { %2470 = vmatprep.subr.bf16.mxu0 %v3172_v8 }
 0x360   : > { %2423 = vmatpush3.bf16.msra.mxu1 %v2752_v42  ;;  %v1763_v42 = vld [vmem:[%s3702_s15 + $0x58] sm:$0xff] }
 0x361   : > { %2424 = vmatprep.subr.bf16.mxu1 %v3172_v8 }
 0x362   : > { %2471 = vmatpush3.bf16.msra.mxu0 %v2761_v51  ;;  %v1754_v51 = vld [vmem:[%s3702_s15 + $0x10] sm:$0xff] }
 0x363   : > { %2472 = vmatprep.subr.bf16.mxu0 %v3172_v8 }
 0x364   : > { %2425 = vmatpush3.bf16.msra.mxu1 %v2753_v43  ;;  %v1762_v43 = vld [vmem:[%s3702_s15 + $0x50] sm:$0xff] }
 0x365   : > { %2450 = vmatprep.subr.bf16.mxu1 %v3172_v8 }
 0x366   : > { %2473 = vmatpush3.bf16.msra.mxu0 %v2763_v53  ;;  %v1752_v53 = vld [vmem:[%s3702_s15] sm:$0xff] }
 0x367   : > { %2427 = vmatmul.mubr.msk.bf16.vlgmr.msra.gmra.mxu1 %vm1209_vm4, %v3499_v16 }
 0x368   : > { %2460 = vmatprep.mubr.msk.bf16.mxu1 %vm3173_vm2, %v3172_v8  ;;  %2451 = vmatpush3.bf16.msra.mxu1 %v2754_v44  ;;  %v1761_v44 = vld [vmem:[%s3702_s15 + $0x48] sm:$0xff] }
 0x369   : > { %2452 = vmatprep.subr.bf16.mxu1 %v3172_v8 }
 0x36c   : > { %2453 = vmatpush3.bf16.msra.mxu1 %v2756_v46  ;;  %v1759_v46 = vld [vmem:[%s3702_s15 + $0x38] sm:$0xff] }
 0x36d   : > { %2454 = vmatprep.subr.bf16.mxu1 %v3172_v8 }
 0x370   : > { %2455 = vmatpush3.bf16.msra.mxu1 %v2758_v48  ;;  %v1757_v48 = vld [vmem:[%s3702_s15 + $0x28] sm:$0xff] }
 0x371   : > { %2456 = vmatprep.subr.bf16.mxu1 %v3172_v8 }
 0x374   : > { %2457 = vmatpush3.bf16.msra.mxu1 %v2760_v50  ;;  %v1755_v50 = vld [vmem:[%s3702_s15 + $0x18] sm:$0xff] }
 0x375   : > { %2458 = vmatprep.subr.bf16.mxu1 %v3172_v8 }
 0x378   : > { %2459 = vmatpush3.bf16.msra.mxu1 %v2762_v52  ;;  %v1753_v52 = vld [vmem:[%s3702_s15 + $0x8] sm:$0xff] }
 0x413   : > { %v1247_v54 = vpop.f32.mrf.mxu1  ;;  %v1459_v55 = vpop.f32.mrf.mxu0 }
 0x415   : > { %v2414_v56 = vpop.f32.mrf.mxu1  ;;  %v2448_v57 = vpop.f32.mrf.mxu0 }
 0x417   : > { %v1250_v58 = vpop.f32.mrf.mxu1  ;;  %v1462_v59 = vpop.f32.mrf.mxu0 }
 0x419   : > { %v2415_v60 = vpop.f32.mrf.mxu1  ;;  %v2449_v61 = vpop.f32.mrf.mxu0 }
 0x427   : > { %v1321_v62 = vpop.f32.mrf.mxu1 }
 0x428   : > { %v1322_v63 = vadd.f32 %v1321_v62, %v1247_v54 }
 0x429   : > { %v2428_v0 = vpop.f32.mrf.mxu1 }
 0x42a   : > { %v1466_v1 = vadd.f32 %v1459_v55, %v1322_v63 }
 0x42b   : > { %v1324_v3 = vpop.f32.mrf.mxu1 }
 0x42c   : > { %v1325_v4 = vadd.f32 %v1324_v3, %v1250_v58  ;;  %v1475_v6 = vadd.f32 %v2297_v2, %v1466_v1 }
 0x42d   : > { %v2429_v5 = vpop.f32.mrf.mxu1 }
 0x42e   : > { %v1467_v7 = vadd.f32 %v1462_v59, %v1325_v4  ;;  %v1477_v9 = vmax.f32 %v1475_v6, 0.0  ;;  %v2002_v6 = vld [vmem:[#allocation19 + $0x8] sm:$0xff] }
 0x430   : > { %v1476_v8 = vadd.f32 %v2297_v2, %v1467_v7 }
 0x432   : > { %v1478_v10 = vmax.f32 %v1476_v8, 0.0  ;;  %v2001_v8 = vld [vmem:[#allocation19] sm:$0xff] }
 0x434   : > { %v1479_v11 = vpack.c.bf16 %v1478_v10, %v1477_v9 }
 0x436   : > { %2461 = vmatmul.mubr.msk.bf16.vlgmr.msra.gmra.mxu1 %vm1209_vm4, %v1479_v11  ;;  %2475 = vmatmul.mubr.msk.bf16.vlgmr.msra.gmra.mxu0 %vm1209_vm4, %v1479_v11  ;;  %v2005_v11 = vld [vmem:[#allocation21] sm:$0xff] }
 0x437   : > { %2482 = vmatprep.mubr.msk.f32.mxu1 %vm1122_vm3, %v1669_v12  ;;  %2524 = vmatprep.mubr.msk.f32.mxu0 %vm1122_vm3, %v1669_v12  ;;  %v2006_v12 = vld [vmem:[#allocation21 + $0x8] sm:$0xff] }
 0x4f6   : > { %v1564_v14 = vpop.f32.mrf.mxu1  ;;  %v1652_v15 = vpop.f32.mrf.mxu0 }
 0x4f7   : > { %v1653_v16 = vadd.f32 %v2305_v13, %v1652_v15  ;;  %v1565_v34 = vadd.f32 %v2298_v30, %v1564_v14 }
 0x4f8   : > { %v2462_v17 = vpop.f32.mrf.mxu1  ;;  %v2476_v18 = vpop.f32.mrf.mxu0 }
 0x4f9   : > { %v1659_v19 = vmul.f32 0.5, %v1653_v16 }
 0x4fa   : > { %v1567_v20 = vpop.f32.mrf.mxu1  ;;  %v1655_v21 = vpop.f32.mrf.mxu0 }
 0x4fb   : > { %2772 = vtanh.f32 %v1659_v19  ;;  %v1656_v22 = vadd.f32 %v2305_v13, %v1655_v21  ;;  %v1568_v32 = vadd.f32 %v2298_v30, %v1567_v20 }
 0x4fc   : > { %v2463_v23 = vpop.f32.mrf.mxu1  ;;  %v2477_v24 = vpop.f32.mrf.mxu0 }
 0x4fd   : > { %v1660_v25 = vmul.f32 0.5, %v1656_v22 }
 0x4ff   : > { %2774 = vtanh.f32 %v1660_v25 }
 0x508   : > { %v2773_v26 = vpop.eup %2772 }
 0x509   : > { %v1663_v27 = vmul.f32 0.5, %v2773_v26 }
 0x50b   : > { %v1665_v31 = vadd.f32 0.5, %v1663_v27 }
 0x50c   : > { %v2775_v28 = vpop.eup %2774 }
 0x50d   : > { %v1664_v29 = vmul.f32 0.5, %v2775_v28  ;;  %v1667_v36 = vmul.f32 %v1665_v31, %v1565_v34 }
 0x50f   : > { %v1666_v33 = vadd.f32 0.5, %v1664_v29 }
 0x511   : > { %v1668_v35 = vmul.f32 %v1666_v33, %v1568_v32 }
 0x513   : > { %2478 = vmatprep.subr.mxu1 %v1668_v35 }
 0x514   : > { %2479 = vmatpush3.msra.mxu1 %v1668_v35 }
 0x515   : > { %2480 = vmatprep.subr.mxu1 %v1667_v36 }
 0x516   : > { %2481 = vmatpush3.msra.mxu1 %v1667_v36 }
 0x517   : > { %2483 = vmatmul.mubr.msk.f32.vlgmr.msra.gmra.mxu1 %vm1122_vm3, %v3608_v37  ;;  %2485 = vmatprep.subr.mxu1 %v3613_v38 }
 0x518   : > { %2486 = vmatpush3.msra.mxu1 %v3613_v38 }
 0x519   : > { %2487 = vmatprep.subr.mxu1 %v3618_v39 }
 0x51a   : > { %2488 = vmatpush3.msra.mxu1 %v3618_v39 }
 0x51b   : > { %2489 = vmatprep.subr.mxu1 %v3627_v40 }
 0x51c   : > { %2490 = vmatpush3.msra.mxu1 %v3627_v40 }
 0x51d   : > { %2491 = vmatprep.subr.mxu1 %v1764_v41 }
 0x51e   : > { %2492 = vmatpush3.msra.mxu1 %v1764_v41 }
 0x51f   : > { %2493 = vmatprep.subr.mxu1 %v1763_v42 }
 0x520   : > { %2494 = vmatpush3.msra.mxu1 %v1763_v42 }
 0x521   : > { %2495 = vmatprep.subr.mxu1 %v1762_v43 }
 0x522   : > { %2496 = vmatpush3.msra.mxu1 %v1762_v43 }
 0x523   : > { %2497 = vmatprep.subr.mxu1 %v1761_v44 }
 0x524   : > { %2498 = vmatpush3.msra.mxu1 %v1761_v44 }
 0x525   : > { %2499 = vmatprep.subr.mxu1 %v1760_v45 }
 0x526   : > { %2500 = vmatpush3.msra.mxu1 %v1760_v45 }
 0x527   : > { %2501 = vmatprep.subr.mxu1 %v1759_v46 }
 0x528   : > { %2502 = vmatpush3.msra.mxu1 %v1759_v46 }
 0x529   : > { %2503 = vmatprep.subr.mxu1 %v1758_v47 }
 0x52a   : > { %2504 = vmatpush3.msra.mxu1 %v1758_v47 }
 0x52b   : > { %2505 = vmatprep.subr.mxu1 %v1757_v48 }
 0x52c   : > { %2506 = vmatpush3.msra.mxu1 %v1757_v48 }
 0x52d   : > { %2507 = vmatprep.subr.mxu1 %v1756_v49 }
 0x52e   : > { %2508 = vmatpush3.msra.mxu1 %v1756_v49 }
 0x52f   : > { %2509 = vmatprep.subr.mxu1 %v1755_v50 }
 0x530   : > { %2510 = vmatpush3.msra.mxu1 %v1755_v50 }
 0x531   : > { %2511 = vmatprep.subr.mxu1 %v1754_v51 }
 0x532   : > { %2512 = vmatpush3.msra.mxu1 %v1754_v51 }
 0x533   : > { %2513 = vmatprep.subr.mxu1 %v1753_v52 }
 0x534   : > { %2514 = vmatpush3.msra.mxu1 %v1753_v52 }
 0x535   : > { %2515 = vmatprep.subr.mxu1 %v1752_v53 }
 0x536   : > { %2516 = vmatpush3.msra.mxu1 %v1752_v53 }
 0x5d7   : > { %v2484_v54 = vpop.f32.mrf.mxu1 }
 0x5d9   : > { %v1743_v55 = vpop.f32.mrf.mxu1 }
 0x5da   : > { %2517 = vmatprep.mubr.f32.mxu1 %v1743_v55 }
 0x5db   : > { %2518 = vmatmul.mubr.f32.vlgmr.msra.gmra.mxu1 %v2484_v54 }
 0x69b   : > { %v2519_v56 = vpop.f32.mrf.mxu1 }
 0x69c   : > { %v1844_v57 = vsub.f32 %v1668_v35, %v2519_v56 }
 0x69d   : > { %v1834_v58 = vpop.f32.mrf.mxu1 }
 0x69e   : > { %v1846_v59 = vmul.f32 %v1844_v57, %v1844_v57  ;;  %v1843_v60 = vsub.f32 %v1667_v36, %v1834_v58 }
 0x6a0   : > { %v1845_v61 = vmul.f32 %v1843_v60, %v1843_v60  ;;  %2520 = vmatprep.subr.mxu0 %v1846_v59 }
 0x6a1   : > { %2521 = vmatpush3.msra.mxu0 %v1846_v59 }
 0x6a2   : > { %2522 = vmatprep.subr.mxu0 %v1845_v61 }
 0x6a3   : > { %2523 = vmatpush3.msra.mxu0 %v1845_v61 }
 0x6a4   : > { %2525 = vmatmul.mubr.msk.f32.vlgmr.msra.gmra.mxu0 %vm1122_vm3, %v3608_v37  ;;  %2527 = vmatprep.subr.mxu0 %v3613_v38 }
 0x6a5   : > { %2528 = vmatpush3.msra.mxu0 %v3613_v38 }
 0x6a6   : > { %2529 = vmatprep.subr.mxu0 %v3618_v39 }
 0x6a7   : > { %2530 = vmatpush3.msra.mxu0 %v3618_v39 }
 0x6a8   : > { %2531 = vmatprep.subr.mxu0 %v3627_v40 }
 0x6a9   : > { %2532 = vmatpush3.msra.mxu0 %v3627_v40 }
 0x6aa   : > { %2533 = vmatprep.subr.mxu0 %v1764_v41 }
 0x6ab   : > { %2534 = vmatpush3.msra.mxu0 %v1764_v41 }
 0x6ac   : > { %2535 = vmatprep.subr.mxu0 %v1763_v42 }
 0x6ad   : > { %2536 = vmatpush3.msra.mxu0 %v1763_v42 }
 0x6ae   : > { %2537 = vmatprep.subr.mxu0 %v1762_v43 }
 0x6af   : > { %2538 = vmatpush3.msra.mxu0 %v1762_v43 }
 0x6b0   : > { %2539 = vmatprep.subr.mxu0 %v1761_v44 }
 0x6b1   : > { %2540 = vmatpush3.msra.mxu0 %v1761_v44 }
 0x6b2   : > { %2541 = vmatprep.subr.mxu0 %v1760_v45 }
 0x6b3   : > { %2542 = vmatpush3.msra.mxu0 %v1760_v45 }
 0x6b4   : > { %2543 = vmatprep.subr.mxu0 %v1759_v46 }
 0x6b5   : > { %2544 = vmatpush3.msra.mxu0 %v1759_v46 }
 0x6b6   : > { %2545 = vmatprep.subr.mxu0 %v1758_v47 }
 0x6b7   : > { %2546 = vmatpush3.msra.mxu0 %v1758_v47 }
 0x6b8   : > { %2547 = vmatprep.subr.mxu0 %v1757_v48 }
 0x6b9   : > { %2548 = vmatpush3.msra.mxu0 %v1757_v48 }
 0x6ba   : > { %2549 = vmatprep.subr.mxu0 %v1756_v49 }
 0x6bb   : > { %2550 = vmatpush3.msra.mxu0 %v1756_v49 }
 0x6bc   : > { %2551 = vmatprep.subr.mxu0 %v1755_v50 }
 0x6bd   : > { %2552 = vmatpush3.msra.mxu0 %v1755_v50 }
 0x6be   : > { %2553 = vmatprep.subr.mxu0 %v1754_v51 }
 0x6bf   : > { %2554 = vmatpush3.msra.mxu0 %v1754_v51 }
 0x6c0   : > { %2555 = vmatprep.subr.mxu0 %v1753_v52 }
 0x6c1   : > { %2556 = vmatpush3.msra.mxu0 %v1753_v52 }
 0x6c2   : > { %2557 = vmatprep.subr.mxu0 %v1752_v53 }
 0x6c3   : > { %2558 = vmatpush3.msra.mxu0 %v1752_v53 }
 0x764   : > { %v2526_v62 = vpop.f32.mrf.mxu0 }
 0x766   : > { %v1913_v63 = vpop.f32.mrf.mxu0 }
 0x767   : > { %2559 = vmatprep.mubr.f32.mxu0 %v1913_v63 }
 0x768   : > { %2560 = vmatmul.mubr.f32.vlgmr.msra.gmra.mxu0 %v2526_v62 }
 0x828   : > { %v2561_v0 = vpop.f32.mrf.mxu0 }
 0x829   : > { %v1994_v1 = vadd.f32 1e-05, %v2561_v0 }
 0x82a   : > { %v1988_v2 = vpop.f32.mrf.mxu0 }
 0x82b   : > { %2776 = vrsqrt.f32 %v1994_v1  ;;  %v1989_v3 = vadd.f32 1e-05, %v1988_v2 }
 0x82d   : > { %2778 = vrsqrt.f32 %v1989_v3 }
 0x838   : > { %v2777_v4 = vpop.eup %2776 }
 0x839   : > { %v2000_v5 = vmul.f32 %v2777_v4, %v1844_v57 }
 0x83a   : > { %v2779_v7 = vpop.eup %2778 }
 0x83b   : > { %v1999_v9 = vmul.f32 %v2779_v7, %v1843_v60  ;;  %v2004_v10 = vmul.f32 %v2002_v6, %v2000_v5 }
 0x83d   : > { %v2003_v13 = vmul.f32 %v2001_v8, %v1999_v9  ;;  %v2008_v15 = vadd.f32 %v2006_v12, %v2004_v10 }
 0x83f   : > { %v2007_v14 = vadd.f32 %v2005_v11, %v2003_v13  ;;  %2010 = vst [vmem:[%s754_s0 + $0x8] sm:$0xff] %v2008_v15 }
 0x841   : > { %2009 = vst [vmem:[%s754_s0] sm:$0xff] %v2007_v14 }
 0x842 PF: > { %s35_s27 = sadd.s32 1, %s3152_s27  }
 0x843   : > { %p32_p3 = scmp.ge.s32.totalorder %s35_s27, 4  }
 0x845   :  { %34 = sbr.rel (!%p32_p3) target bundleno = 12 (0xc), region = 178 }
 0x84a   :  { %2033 = vsyncpa [#allocation3], 1 }
 0x84b   :  { %2035 = vsyncpa [#allocation3 + $0x1], 1 }
 0x84c   :  { %2036 = vsyncpa [#allocation5], 1 }
 0x84d   :  { %2037 = vsyncpa [#allocation8], 1 }
 0x84e   :  { %2038 = vsyncpa [#allocation11], 1 }
 0x84f   :  { %2039 = vsyncpa [#allocation14], 1 }
 0x850   :  { %2040 = vsyncpa [#allocation17], 1 }
 0x851   :  { %2041 = vsyncpa [#allocation20], 1 }

</bundles_post_ra>
